<compile_context>
chip_gen: v7x
topology: tpu7x:2x2x1
jax: 0.10.0
libtpu: 0.0.40
codegen_flags: <defaults>
</compile_context>

<pallas_src>
import functools

import jax
import jax.numpy as jnp
from jax.experimental import pallas as pl
from jax.experimental.pallas import tpu as pltpu


def _round_up(x, m):
    return (x + m - 1) // m * m


def _tpu_generation():
    """Best-effort TPU generation sniff for perf defaults.

    Only affects tiling / buffering / gate precision defaults (gate precision is
    relaxed to bf16 only on v6e/v7x and only in the bf16-matmul path); numerics
    of the f32 path are unchanged regardless of detection."""
    try:
        kind = jax.devices()[0].device_kind.lower()
    except Exception:
        kind = ""
    is_v5e = ("v5 lite" in kind) or ("v5e" in kind) or ("v5litepod" in kind)
    is_v7 = "v7" in kind
    is_v6_plus = ("v6" in kind) or is_v7
    mxu_rows = 128 if is_v5e else 256           # v5e: 4x128^2 MXU; v6e/v7x: 2x256^2
    num_cores = 2 if is_v7 else 1               # v7x: 2 TensorCores per chip
    vmem_limit = (48 if is_v7 else 64) * 1024 * 1024  # v7x only has 64 MiB VMEM
    return mxu_rows, num_cores, is_v6_plus, vmem_limit


def _choose_batch_block(B, mxu_rows, num_cores):
    """Fill the MXU M dimension, but keep >= num_cores grid blocks on v7x."""
    bp8 = _round_up(B, 8)
    bb = min(mxu_rows, bp8)
    if num_cores > 1 and bp8 >= num_cores * 8:
        bb = min(bb, _round_up(pl.cdiv(bp8, num_cores), 8))
    return max(bb, 8)


def lstm_kernel(x_ref, w_ih_ref, w_hh_ref, b_ref, w_fc_ref, b_fc_ref, out_ref,
                xp_ref, h_ref, c_ref, *, gate_dtype, unrolled):
    T, bb, I = x_ref.shape          # time-major x block: (T, batch_block, I)
    Hp = w_hh_ref.shape[0]          # lane-padded hidden size (multiple of 128)
    G = 4 * Hp

    w_ih = w_ih_ref[...]            # (I, 4Hp)   (bf16 or f32)
    w_hh = w_hh_ref[...]            # (Hp, 4Hp)

    # --- Hoisted input projection: ONE tall MXU matmul over all timesteps. ---
    # bb is a multiple of 8, so the leading-dim merge/split is tile-aligned.
    # TODO(synk): chunk this projection over T (or store xp in bf16) for very
    # long sequences to bound the (T, bb, 4Hp) staging buffer on v7x's 64 MiB VMEM.
    x2d = x_ref[...].reshape(T * bb, I)
    xp = jnp.dot(x2d.astype(w_ih.dtype), w_ih,
                 preferred_element_type=jnp.float32) + b_ref[...]
    xp_ref[...] = xp.reshape(T, bb, G)          # time-major staging, f32

    # --- Recurrence: h/c in explicit VMEM scratch (bounded vreg pressure). ---
    h_ref[...] = jnp.zeros_like(h_ref)
    c_ref[...] = jnp.zeros_like(c_ref)

    def step(t, carry):
        h = h_ref[...]
        gates = xp_ref[t] + jnp.dot(h.astype(w_hh.dtype), w_hh,
                                    preferred_element_type=jnp.float32)
        g = gates.astype(gate_dtype)            # bf16 gate math on v6e/v7x only
        # Lane-aligned 128-wide gate slices (Hp is a multiple of 128).
        i_g = jax.nn.sigmoid(g[:, 0 * Hp:1 * Hp])
        f_g = jax.nn.sigmoid(g[:, 1 * Hp:2 * Hp])
        g_g = jnp.tanh(g[:, 2 * Hp:3 * Hp])
        o_g = jax.nn.sigmoid(g[:, 3 * Hp:4 * Hp])
        c = f_g * c_ref[...] + i_g * g_g        # promotes to f32 state
        c_ref[...] = c.astype(jnp.float32)
        h_ref[...] = (o_g * jnp.tanh(c)).astype(jnp.float32)
        return carry

    if unrolled:                                # small static T: full unroll
        for t in range(T):
            step(t, 0)
    else:                                       # long T: bound code size / live ranges
        jax.lax.fori_loop(0, T, step, 0, unroll=4)

    # --- Final FC on the last hidden state only (lane-dense Op output). ---
    w_fc = w_fc_ref[...]                        # (Hp, Op)
    out = jnp.dot(h_ref[...].astype(w_fc.dtype), w_fc,
                  preferred_element_type=jnp.float32) + b_fc_ref[...]
    out_ref[...] = out.astype(out_ref.dtype)


def lstm_model_forward(x, w_ih, w_hh, b_ih, b_hh, w_fc, b_fc, *,
                       matmul_dtype=jnp.bfloat16, gate_dtype=None,
                       batch_block=None):
    """x: (B, T, input_size) float32, batch-first.  Returns (B, output_size).

    matmul_dtype: dtype of MXU operands (bf16 default; f32 for tight numerics).
    gate_dtype:   None = auto (bf16 sigmoid/tanh on v6e/v7x when matmuls are
                  bf16, f32 otherwise).  State updates are always f32.
    """
    B, T, I = x.shape
    H = w_hh.shape[1]
    O = w_fc.shape[0]

    mxu_rows, num_cores, is_v6_plus, vmem_limit = _tpu_generation()

    Hp = _round_up(H, 128)          # lane-align each gate block
    Op = _round_up(O, 128)          # lane-dense output store (unmasked vst)

    if batch_block is None:
        batch_block = _choose_batch_block(B, mxu_rows, num_cores)
    batch_block = max(_round_up(batch_block, 8), 8)
    Bp = _round_up(B, batch_block)
    nb = Bp // batch_block

    if gate_dtype is None:
        gate_dtype = (jnp.bfloat16
                      if (matmul_dtype == jnp.bfloat16 and is_v6_plus)
                      else jnp.float32)

    # --- Weight prep (tiny one-off XLA ops; gate blocks padded H -> Hp). ---
    def pad_gate_rows(w):           # (4H, cols) -> (4Hp, cols)
        cols = w.shape[1]
        w4 = w.reshape(4, H, cols)
        w4 = jnp.pad(w4, ((0, 0), (0, Hp - H), (0, 0)))
        return w4.reshape(4 * Hp, cols)

    w_ih_t = jnp.transpose(pad_gate_rows(w_ih)).astype(matmul_dtype)       # (I, 4Hp)
    w_hh_t = jnp.transpose(
        jnp.pad(pad_gate_rows(w_hh), ((0, 0), (0, Hp - H)))
    ).astype(matmul_dtype)                                                 # (Hp, 4Hp)
    b = jnp.pad((b_ih + b_hh).reshape(4, H), ((0, 0), (0, Hp - H)))
    b = b.reshape(1, 4 * Hp).astype(jnp.float32)                           # (1, 4Hp)
    w_fc_t = jnp.transpose(
        jnp.pad(w_fc, ((0, Op - O), (0, Hp - H)))).astype(matmul_dtype)    # (Hp, Op)
    b_fc2 = jnp.pad(b_fc, (0, Op - O)).reshape(1, Op).astype(jnp.float32)  # (1, Op)

    # Pad batch to a block multiple and lay x out time-major (T, Bp, I) so the
    # hoisted projection lands time-major in VMEM (contiguous per-step slabs).
    x_p = x if Bp == B else jnp.pad(x, ((0, Bp - B), (0, 0), (0, 0)))
    x_tm = jnp.swapaxes(x_p, 0, 1)                                         # (T, Bp, I)

    kernel = functools.partial(lstm_kernel, gate_dtype=gate_dtype,
                               unrolled=(T <= 16))

    # Grid-invariant operands: single-buffered (halves weight VMEM footprint).
    weight_specs = [
        pl.BlockSpec((I, 4 * Hp), lambda bi: (0, 0), pipeline_mode=pl.Buffered(1)),
        pl.BlockSpec((Hp, 4 * Hp), lambda bi: (0, 0), pipeline_mode=pl.Buffered(1)),
        pl.BlockSpec((1, 4 * Hp), lambda bi: (0, 0), pipeline_mode=pl.Buffered(1)),
        pl.BlockSpec((Hp, Op), lambda bi: (0, 0), pipeline_mode=pl.Buffered(1)),
        pl.BlockSpec((1, Op), lambda bi: (0, 0), pipeline_mode=pl.Buffered(1)),
    ]

    out_padded = pl.pallas_call(
        kernel,
        out_shape=jax.ShapeDtypeStruct((Bp, Op), x.dtype),
        grid_spec=pltpu.PrefetchScalarGridSpec(
            num_scalar_prefetch=0,
            grid=(nb,),                                       # batch blocks
            in_specs=[pl.BlockSpec((T, batch_block, I), lambda bi: (0, bi, 0))]
                     + weight_specs,
            out_specs=pl.BlockSpec((batch_block, Op), lambda bi: (bi, 0)),
            scratch_shapes=[
                pltpu.VMEM((T, batch_block, 4 * Hp), jnp.float32),   # xp staging
                pltpu.VMEM((batch_block, Hp), jnp.float32),          # h
                pltpu.VMEM((batch_block, Hp), jnp.float32),          # c
            ],
        ),
        compiler_params=pltpu.CompilerParams(
            dimension_semantics=("parallel",),     # batch blocks -> both TCs on v7x
            vmem_limit_bytes=vmem_limit),
    )(x_tm, w_ih_t, w_hh_t, b, w_fc_t, b_fc2)

    return out_padded[:B, :O]


def lstm_model_reference(x, w_ih, w_hh, b_ih, b_hh, w_fc, b_fc):
    """Pure-JAX reference matching PyTorch nn.LSTM (batch_first) + nn.Linear."""
    B, T, I = x.shape
    H = w_hh.shape[1]

    def step(carry, x_t):
        h, c = carry
        gates = x_t @ w_ih.T + h @ w_hh.T + b_ih + b_hh
        i = jax.nn.sigmoid(gates[:, 0 * H:1 * H])
        f = jax.nn.sigmoid(gates[:, 1 * H:2 * H])
        g = jnp.tanh(gates[:, 2 * H:3 * H])
        o = jax.nn.sigmoid(gates[:, 3 * H:4 * H])
        c_new = f * c + i * g
        h_new = o * jnp.tanh(c_new)
        return (h_new, c_new), None

    h0 = jnp.zeros((B, H), jnp.float32)
    c0 = jnp.zeros((B, H), jnp.float32)
    (h_last, _), _ = jax.lax.scan(step, (h0, c0), jnp.transpose(x, (1, 0, 2)))
    return h_last @ w_fc.T + b_fc


if __name__ == "__main__":
    # Small shapes consistent with the module's forward.
    B, T, INPUT, HIDDEN, OUTPUT = 2, 8, 16, 32, 4

    key = jax.random.PRNGKey(0)
    ks = jax.random.split(key, 7)
    scale = 1.0 / jnp.sqrt(HIDDEN)

    x = jax.random.normal(ks[0], (B, T, INPUT), jnp.float32)
    w_ih = jax.random.uniform(ks[1], (4 * HIDDEN, INPUT), jnp.float32, -scale, scale)
    w_hh = jax.random.uniform(ks[2], (4 * HIDDEN, HIDDEN), jnp.float32, -scale, scale)
    b_ih = jax.random.uniform(ks[3], (4 * HIDDEN,), jnp.float32, -scale, scale)
    b_hh = jax.random.uniform(ks[4], (4 * HIDDEN,), jnp.float32, -scale, scale)
    w_fc = jax.random.uniform(ks[5], (OUTPUT, HIDDEN), jnp.float32, -scale, scale)
    b_fc = jax.random.uniform(ks[6], (OUTPUT,), jnp.float32, -scale, scale)

    ref = lstm_model_reference(x, w_ih, w_hh, b_ih, b_hh, w_fc, b_fc)

    # f32 MXU path (f32 gates): tight match with the f32 reference.
    out_f32 = lstm_model_forward(x, w_ih, w_hh, b_ih, b_hh, w_fc, b_fc,
                                 matmul_dtype=jnp.float32)
    out_f32 = jax.block_until_ready(out_f32)
    assert out_f32.shape == (B, OUTPUT)
    assert jnp.max(jnp.abs(out_f32 - ref)) < 1e-5

    # Default bf16 MXU-operand path (bf16 gates on v6e/v7x): relaxed tolerance.
    out_bf16 = lstm_model_forward(x, w_ih, w_hh, b_ih, b_hh, w_fc, b_fc)
    out_bf16 = jax.block_until_ready(out_bf16)
    assert out_bf16.shape == (B, OUTPUT)
    assert jnp.max(jnp.abs(out_bf16 - ref)) < 1e-1

    print("KERNEL_OK")
</pallas_src>

<mosaic_0001>
module attributes {stable_mosaic.version = 11 : i64} {
  func.func @lstm_kernel(%arg0: i32, %arg1: memref<8x8x16xf32, #tpu.memory_space<vmem>>, %arg2: memref<16x512xf32, #tpu.memory_space<vmem>>, %arg3: memref<128x512xf32, #tpu.memory_space<vmem>>, %arg4: memref<1x512xf32, #tpu.memory_space<vmem>>, %arg5: memref<128x128xf32, #tpu.memory_space<vmem>>, %arg6: memref<1x128xf32, #tpu.memory_space<vmem>>, %arg7: memref<8x128xf32, #tpu.memory_space<vmem>>, %arg8: memref<8x8x512xf32, #tpu.memory_space<vmem>>, %arg9: memref<8x128xf32, #tpu.memory_space<vmem>>, %arg10: memref<8x128xf32, #tpu.memory_space<vmem>>) attributes {dimension_semantics = [#tpu.dimension_semantics<parallel>], iteration_bounds = array<i64: 1>, scalar_prefetch = 0 : i64, scratch_operands = 3 : i64, tpu.core_type = #tpu.core_type<tc>, window_params = [{transform_indices = @transform_0, window_bounds = array<i64: 8, 8, 16>}, {pipeline_mode = #tpu.pipeline_mode<synchronous>, transform_indices = @transform_1, window_bounds = array<i64: 16, 512>}, {pipeline_mode = #tpu.pipeline_mode<synchronous>, transform_indices = @transform_2, window_bounds = array<i64: 128, 512>}, {pipeline_mode = #tpu.pipeline_mode<synchronous>, transform_indices = @transform_3, window_bounds = array<i64: 1, 512>}, {pipeline_mode = #tpu.pipeline_mode<synchronous>, transform_indices = @transform_4, window_bounds = array<i64: 128, 128>}, {pipeline_mode = #tpu.pipeline_mode<synchronous>, transform_indices = @transform_5, window_bounds = array<i64: 1, 128>}, {transform_indices = @transform_6, window_bounds = array<i64: 8, 128>}]} {
    %c0 = arith.constant 0 : index
    %c0_0 = arith.constant 0 : index
    %0 = vector.load %arg2[%c0, %c0_0] : memref<16x512xf32, #tpu.memory_space<vmem>>, vector<16x512xf32>
    %c0_1 = arith.constant 0 : index
    %c0_2 = arith.constant 0 : index
    %1 = vector.load %arg3[%c0_1, %c0_2] : memref<128x512xf32, #tpu.memory_space<vmem>>, vector<128x512xf32>
    %c0_3 = arith.constant 0 : index
    %c0_4 = arith.constant 0 : index
    %c0_5 = arith.constant 0 : index
    %2 = vector.load %arg1[%c0_3, %c0_4, %c0_5] : memref<8x8x16xf32, #tpu.memory_space<vmem>>, vector<8x8x16xf32>
    %3 = vector.shape_cast %2 : vector<8x8x16xf32> to vector<64x16xf32>
    %cst = arith.constant dense<0.000000e+00> : vector<64x512xf32>
    %4 = tpu.matmul %3, %0, %cst {dimension_numbers = #tpu.dot_dimension_numbers<[1], [0], [0], [1], [0, 0, 1, 1], [], []>} : vector<64x16xf32>, vector<16x512xf32>, vector<64x512xf32> -> vector<64x512xf32>
    %c0_6 = arith.constant 0 : index
    %c0_7 = arith.constant 0 : index
    %5 = vector.load %arg4[%c0_6, %c0_7] : memref<1x512xf32, #tpu.memory_space<vmem>>, vector<1x512xf32>
    %6 = vector.broadcast %5 : vector<1x512xf32> to vector<64x512xf32>
    %7 = arith.addf %4, %6 : vector<64x512xf32>
    %8 = vector.shape_cast %7 : vector<64x512xf32> to vector<8x8x512xf32>
    %c0_8 = arith.constant 0 : index
    %c0_9 = arith.constant 0 : index
    %c0_10 = arith.constant 0 : index
    %9 = vector.load %arg8[%c0_8, %c0_9, %c0_10] : memref<8x8x512xf32, #tpu.memory_space<vmem>>, vector<8x8x512xf32>
    tpu.vector_store %arg8[%c0_8, %c0_9, %c0_10], %8 {strides = array<i32>} : memref<8x8x512xf32, #tpu.memory_space<vmem>>, vector<8x8x512xf32>,
    %cst_11 = arith.constant 0.000000e+00 : f32
    %10 = vector.broadcast %cst_11 : f32 to vector<8x128xf32>
    %c0_12 = arith.constant 0 : index
    %c0_13 = arith.constant 0 : index
    %11 = vector.load %arg9[%c0_12, %c0_13] : memref<8x128xf32, #tpu.memory_space<vmem>>, vector<8x128xf32>
    tpu.vector_store %arg9[%c0_12, %c0_13], %10 {strides = array<i32>} : memref<8x128xf32, #tpu.memory_space<vmem>>, vector<8x128xf32>,
    %cst_14 = arith.constant 0.000000e+00 : f32
    %12 = vector.broadcast %cst_14 : f32 to vector<8x128xf32>
    %c0_15 = arith.constant 0 : index
    %c0_16 = arith.constant 0 : index
    %13 = vector.load %arg10[%c0_15, %c0_16] : memref<8x128xf32, #tpu.memory_space<vmem>>, vector<8x128xf32>
    tpu.vector_store %arg10[%c0_15, %c0_16], %12 {strides = array<i32>} : memref<8x128xf32, #tpu.memory_space<vmem>>, vector<8x128xf32>,
    %c0_17 = arith.constant 0 : index
    %c0_18 = arith.constant 0 : index
    %14 = vector.load %arg9[%c0_17, %c0_18] : memref<8x128xf32, #tpu.memory_space<vmem>>, vector<8x128xf32>
    %c0_19 = arith.constant 0 : index
    %c0_20 = arith.constant 0 : index
    %c0_21 = arith.constant 0 : index
    %15 = vector.load %arg8[%c0_19, %c0_20, %c0_21] : memref<8x8x512xf32, #tpu.memory_space<vmem>>, vector<1x8x512xf32>
    %16 = vector.shape_cast %15 : vector<1x8x512xf32> to vector<8x512xf32>
    %cst_22 = arith.constant dense<0.000000e+00> : vector<8x512xf32>
    %17 = tpu.matmul %14, %1, %cst_22 {dimension_numbers = #tpu.dot_dimension_numbers<[1], [0], [0], [1], [0, 0, 1, 1], [], []>} : vector<8x128xf32>, vector<128x512xf32>, vector<8x512xf32> -> vector<8x512xf32>
    %18 = arith.addf %16, %17 : vector<8x512xf32>
    %19 = vector.extract_strided_slice %18 {offsets = [0, 0], sizes = [8, 128], strides = [1, 1]} : vector<8x512xf32> to vector<8x128xf32>
    %20 = arith.negf %19 : vector<8x128xf32>
    %21 = math.exp %20 : vector<8x128xf32>
    %cst_23 = arith.constant 1.000000e+00 : f32
    %22 = vector.broadcast %cst_23 : f32 to vector<8x128xf32>
    %23 = arith.addf %22, %21 : vector<8x128xf32>
    %24 = arith.divf %22, %23 : vector<8x128xf32>
    %25 = vector.extract_strided_slice %18 {offsets = [0, 128], sizes = [8, 128], strides = [1, 1]} : vector<8x512xf32> to vector<8x128xf32>
    %26 = arith.negf %25 : vector<8x128xf32>
    %27 = math.exp %26 : vector<8x128xf32>
    %cst_24 = arith.constant 1.000000e+00 : f32
    %28 = vector.broadcast %cst_24 : f32 to vector<8x128xf32>
    %29 = arith.addf %28, %27 : vector<8x128xf32>
    %30 = arith.divf %28, %29 : vector<8x128xf32>
    %31 = vector.extract_strided_slice %18 {offsets = [0, 256], sizes = [8, 128], strides = [1, 1]} : vector<8x512xf32> to vector<8x128xf32>
    %32 = math.tanh %31 : vector<8x128xf32>
    %33 = vector.extract_strided_slice %18 {offsets = [0, 384], sizes = [8, 128], strides = [1, 1]} : vector<8x512xf32> to vector<8x128xf32>
    %34 = arith.negf %33 : vector<8x128xf32>
    %35 = math.exp %34 : vector<8x128xf32>
    %cst_25 = arith.constant 1.000000e+00 : f32
    %36 = vector.broadcast %cst_25 : f32 to vector<8x128xf32>
    %37 = arith.addf %36, %35 : vector<8x128xf32>
    %38 = arith.divf %36, %37 : vector<8x128xf32>
    %c0_26 = arith.constant 0 : index
    %c0_27 = arith.constant 0 : index
    %39 = vector.load %arg10[%c0_26, %c0_27] : memref<8x128xf32, #tpu.memory_space<vmem>>, vector<8x128xf32>
    %40 = arith.mulf %30, %39 : vector<8x128xf32>
    %41 = arith.mulf %24, %32 : vector<8x128xf32>
    %42 = arith.addf %40, %41 : vector<8x128xf32>
    %c0_28 = arith.constant 0 : index
    %c0_29 = arith.constant 0 : index
    %43 = vector.load %arg10[%c0_28, %c0_29] : memref<8x128xf32, #tpu.memory_space<vmem>>, vector<8x128xf32>
    tpu.vector_store %arg10[%c0_28, %c0_29], %42 {strides = array<i32>} : memref<8x128xf32, #tpu.memory_space<vmem>>, vector<8x128xf32>,
    %44 = math.tanh %42 : vector<8x128xf32>
    %45 = arith.mulf %38, %44 : vector<8x128xf32>
    %c0_30 = arith.constant 0 : index
    %c0_31 = arith.constant 0 : index
    %46 = vector.load %arg9[%c0_30, %c0_31] : memref<8x128xf32, #tpu.memory_space<vmem>>, vector<8x128xf32>
    tpu.vector_store %arg9[%c0_30, %c0_31], %45 {strides = array<i32>} : memref<8x128xf32, #tpu.memory_space<vmem>>, vector<8x128xf32>,
    %c0_32 = arith.constant 0 : index
    %c0_33 = arith.constant 0 : index
    %47 = vector.load %arg9[%c0_32, %c0_33] : memref<8x128xf32, #tpu.memory_space<vmem>>, vector<8x128xf32>
    %c1 = arith.constant 1 : index
    %c0_34 = arith.constant 0 : index
    %c0_35 = arith.constant 0 : index
    %48 = vector.load %arg8[%c1, %c0_34, %c0_35] : memref<8x8x512xf32, #tpu.memory_space<vmem>>, vector<1x8x512xf32>
    %49 = vector.shape_cast %48 : vector<1x8x512xf32> to vector<8x512xf32>
    %cst_36 = arith.constant dense<0.000000e+00> : vector<8x512xf32>
    %50 = tpu.matmul %47, %1, %cst_36 {dimension_numbers = #tpu.dot_dimension_numbers<[1], [0], [0], [1], [0, 0, 1, 1], [], []>} : vector<8x128xf32>, vector<128x512xf32>, vector<8x512xf32> -> vector<8x512xf32>
    %51 = arith.addf %49, %50 : vector<8x512xf32>
    %52 = vector.extract_strided_slice %51 {offsets = [0, 0], sizes = [8, 128], strides = [1, 1]} : vector<8x512xf32> to vector<8x128xf32>
    %53 = arith.negf %52 : vector<8x128xf32>
    %54 = math.exp %53 : vector<8x128xf32>
    %cst_37 = arith.constant 1.000000e+00 : f32
    %55 = vector.broadcast %cst_37 : f32 to vector<8x128xf32>
    %56 = arith.addf %55, %54 : vector<8x128xf32>
    %57 = arith.divf %55, %56 : vector<8x128xf32>
    %58 = vector.extract_strided_slice %51 {offsets = [0, 128], sizes = [8, 128], strides = [1, 1]} : vector<8x512xf32> to vector<8x128xf32>
    %59 = arith.negf %58 : vector<8x128xf32>
    %60 = math.exp %59 : vector<8x128xf32>
    %cst_38 = arith.constant 1.000000e+00 : f32
    %61 = vector.broadcast %cst_38 : f32 to vector<8x128xf32>
    %62 = arith.addf %61, %60 : vector<8x128xf32>
    %63 = arith.divf %61, %62 : vector<8x128xf32>
    %64 = vector.extract_strided_slice %51 {offsets = [0, 256], sizes = [8, 128], strides = [1, 1]} : vector<8x512xf32> to vector<8x128xf32>
    %65 = math.tanh %64 : vector<8x128xf32>
    %66 = vector.extract_strided_slice %51 {offsets = [0, 384], sizes = [8, 128], strides = [1, 1]} : vector<8x512xf32> to vector<8x128xf32>
    %67 = arith.negf %66 : vector<8x128xf32>
    %68 = math.exp %67 : vector<8x128xf32>
    %cst_39 = arith.constant 1.000000e+00 : f32
    %69 = vector.broadcast %cst_39 : f32 to vector<8x128xf32>
    %70 = arith.addf %69, %68 : vector<8x128xf32>
    %71 = arith.divf %69, %70 : vector<8x128xf32>
    %c0_40 = arith.constant 0 : index
    %c0_41 = arith.constant 0 : index
    %72 = vector.load %arg10[%c0_40, %c0_41] : memref<8x128xf32, #tpu.memory_space<vmem>>, vector<8x128xf32>
    %73 = arith.mulf %63, %72 : vector<8x128xf32>
    %74 = arith.mulf %57, %65 : vector<8x128xf32>
    %75 = arith.addf %73, %74 : vector<8x128xf32>
    %c0_42 = arith.constant 0 : index
    %c0_43 = arith.constant 0 : index
    %76 = vector.load %arg10[%c0_42, %c0_43] : memref<8x128xf32, #tpu.memory_space<vmem>>, vector<8x128xf32>
    tpu.vector_store %arg10[%c0_42, %c0_43], %75 {strides = array<i32>} : memref<8x128xf32, #tpu.memory_space<vmem>>, vector<8x128xf32>,
    %77 = math.tanh %75 : vector<8x128xf32>
    %78 = arith.mulf %71, %77 : vector<8x128xf32>
    %c0_44 = arith.constant 0 : index
    %c0_45 = arith.constant 0 : index
    %79 = vector.load %arg9[%c0_44, %c0_45] : memref<8x128xf32, #tpu.memory_space<vmem>>, vector<8x128xf32>
    tpu.vector_store %arg9[%c0_44, %c0_45], %78 {strides = array<i32>} : memref<8x128xf32, #tpu.memory_space<vmem>>, vector<8x128xf32>,
    %c0_46 = arith.constant 0 : index
    %c0_47 = arith.constant 0 : index
    %80 = vector.load %arg9[%c0_46, %c0_47] : memref<8x128xf32, #tpu.memory_space<vmem>>, vector<8x128xf32>
    %c2 = arith.constant 2 : index
    %c0_48 = arith.constant 0 : index
    %c0_49 = arith.constant 0 : index
    %81 = vector.load %arg8[%c2, %c0_48, %c0_49] : memref<8x8x512xf32, #tpu.memory_space<vmem>>, vector<1x8x512xf32>
    %82 = vector.shape_cast %81 : vector<1x8x512xf32> to vector<8x512xf32>
    %cst_50 = arith.constant dense<0.000000e+00> : vector<8x512xf32>
    %83 = tpu.matmul %80, %1, %cst_50 {dimension_numbers = #tpu.dot_dimension_numbers<[1], [0], [0], [1], [0, 0, 1, 1], [], []>} : vector<8x128xf32>, vector<128x512xf32>, vector<8x512xf32> -> vector<8x512xf32>
    %84 = arith.addf %82, %83 : vector<8x512xf32>
    %85 = vector.extract_strided_slice %84 {offsets = [0, 0], sizes = [8, 128], strides = [1, 1]} : vector<8x512xf32> to vector<8x128xf32>
    %86 = arith.negf %85 : vector<8x128xf32>
    %87 = math.exp %86 : vector<8x128xf32>
    %cst_51 = arith.constant 1.000000e+00 : f32
    %88 = vector.broadcast %cst_51 : f32 to vector<8x128xf32>
    %89 = arith.addf %88, %87 : vector<8x128xf32>
    %90 = arith.divf %88, %89 : vector<8x128xf32>
    %91 = vector.extract_strided_slice %84 {offsets = [0, 128], sizes = [8, 128], strides = [1, 1]} : vector<8x512xf32> to vector<8x128xf32>
    %92 = arith.negf %91 : vector<8x128xf32>
    %93 = math.exp %92 : vector<8x128xf32>
    %cst_52 = arith.constant 1.000000e+00 : f32
    %94 = vector.broadcast %cst_52 : f32 to vector<8x128xf32>
    %95 = arith.addf %94, %93 : vector<8x128xf32>
    %96 = arith.divf %94, %95 : vector<8x128xf32>
    %97 = vector.extract_strided_slice %84 {offsets = [0, 256], sizes = [8, 128], strides = [1, 1]} : vector<8x512xf32> to vector<8x128xf32>
    %98 = math.tanh %97 : vector<8x128xf32>
    %99 = vector.extract_strided_slice %84 {offsets = [0, 384], sizes = [8, 128], strides = [1, 1]} : vector<8x512xf32> to vector<8x128xf32>
    %100 = arith.negf %99 : vector<8x128xf32>
    %101 = math.exp %100 : vector<8x128xf32>
    %cst_53 = arith.constant 1.000000e+00 : f32
    %102 = vector.broadcast %cst_53 : f32 to vector<8x128xf32>
    %103 = arith.addf %102, %101 : vector<8x128xf32>
    %104 = arith.divf %102, %103 : vector<8x128xf32>
    %c0_54 = arith.constant 0 : index
    %c0_55 = arith.constant 0 : index
    %105 = vector.load %arg10[%c0_54, %c0_55] : memref<8x128xf32, #tpu.memory_space<vmem>>, vector<8x128xf32>
    %106 = arith.mulf %96, %105 : vector<8x128xf32>
    %107 = arith.mulf %90, %98 : vector<8x128xf32>
    %108 = arith.addf %106, %107 : vector<8x128xf32>
    %c0_56 = arith.constant 0 : index
    %c0_57 = arith.constant 0 : index
    %109 = vector.load %arg10[%c0_56, %c0_57] : memref<8x128xf32, #tpu.memory_space<vmem>>, vector<8x128xf32>
    tpu.vector_store %arg10[%c0_56, %c0_57], %108 {strides = array<i32>} : memref<8x128xf32, #tpu.memory_space<vmem>>, vector<8x128xf32>,
    %110 = math.tanh %108 : vector<8x128xf32>
    %111 = arith.mulf %104, %110 : vector<8x128xf32>
    %c0_58 = arith.constant 0 : index
    %c0_59 = arith.constant 0 : index
    %112 = vector.load %arg9[%c0_58, %c0_59] : memref<8x128xf32, #tpu.memory_space<vmem>>, vector<8x128xf32>
    tpu.vector_store %arg9[%c0_58, %c0_59], %111 {strides = array<i32>} : memref<8x128xf32, #tpu.memory_space<vmem>>, vector<8x128xf32>,
    %c0_60 = arith.constant 0 : index
    %c0_61 = arith.constant 0 : index
    %113 = vector.load %arg9[%c0_60, %c0_61] : memref<8x128xf32, #tpu.memory_space<vmem>>, vector<8x128xf32>
    %c3 = arith.constant 3 : index
    %c0_62 = arith.constant 0 : index
    %c0_63 = arith.constant 0 : index
    %114 = vector.load %arg8[%c3, %c0_62, %c0_63] : memref<8x8x512xf32, #tpu.memory_space<vmem>>, vector<1x8x512xf32>
    %115 = vector.shape_cast %114 : vector<1x8x512xf32> to vector<8x512xf32>
    %cst_64 = arith.constant dense<0.000000e+00> : vector<8x512xf32>
    %116 = tpu.matmul %113, %1, %cst_64 {dimension_numbers = #tpu.dot_dimension_numbers<[1], [0], [0], [1], [0, 0, 1, 1], [], []>} : vector<8x128xf32>, vector<128x512xf32>, vector<8x512xf32> -> vector<8x512xf32>
    %117 = arith.addf %115, %116 : vector<8x512xf32>
    %118 = vector.extract_strided_slice %117 {offsets = [0, 0], sizes = [8, 128], strides = [1, 1]} : vector<8x512xf32> to vector<8x128xf32>
    %119 = arith.negf %118 : vector<8x128xf32>
    %120 = math.exp %119 : vector<8x128xf32>
    %cst_65 = arith.constant 1.000000e+00 : f32
    %121 = vector.broadcast %cst_65 : f32 to vector<8x128xf32>
    %122 = arith.addf %121, %120 : vector<8x128xf32>
    %123 = arith.divf %121, %122 : vector<8x128xf32>
    %124 = vector.extract_strided_slice %117 {offsets = [0, 128], sizes = [8, 128], strides = [1, 1]} : vector<8x512xf32> to vector<8x128xf32>
    %125 = arith.negf %124 : vector<8x128xf32>
    %126 = math.exp %125 : vector<8x128xf32>
    %cst_66 = arith.constant 1.000000e+00 : f32
    %127 = vector.broadcast %cst_66 : f32 to vector<8x128xf32>
    %128 = arith.addf %127, %126 : vector<8x128xf32>
    %129 = arith.divf %127, %128 : vector<8x128xf32>
    %130 = vector.extract_strided_slice %117 {offsets = [0, 256], sizes = [8, 128], strides = [1, 1]} : vector<8x512xf32> to vector<8x128xf32>
    %131 = math.tanh %130 : vector<8x128xf32>
    %132 = vector.extract_strided_slice %117 {offsets = [0, 384], sizes = [8, 128], strides = [1, 1]} : vector<8x512xf32> to vector<8x128xf32>
    %133 = arith.negf %132 : vector<8x128xf32>
    %134 = math.exp %133 : vector<8x128xf32>
    %cst_67 = arith.constant 1.000000e+00 : f32
    %135 = vector.broadcast %cst_67 : f32 to vector<8x128xf32>
    %136 = arith.addf %135, %134 : vector<8x128xf32>
    %137 = arith.divf %135, %136 : vector<8x128xf32>
    %c0_68 = arith.constant 0 : index
    %c0_69 = arith.constant 0 : index
    %138 = vector.load %arg10[%c0_68, %c0_69] : memref<8x128xf32, #tpu.memory_space<vmem>>, vector<8x128xf32>
    %139 = arith.mulf %129, %138 : vector<8x128xf32>
    %140 = arith.mulf %123, %131 : vector<8x128xf32>
    %141 = arith.addf %139, %140 : vector<8x128xf32>
    %c0_70 = arith.constant 0 : index
    %c0_71 = arith.constant 0 : index
    %142 = vector.load %arg10[%c0_70, %c0_71] : memref<8x128xf32, #tpu.memory_space<vmem>>, vector<8x128xf32>
    tpu.vector_store %arg10[%c0_70, %c0_71], %141 {strides = array<i32>} : memref<8x128xf32, #tpu.memory_space<vmem>>, vector<8x128xf32>,
    %143 = math.tanh %141 : vector<8x128xf32>
    %144 = arith.mulf %137, %143 : vector<8x128xf32>
    %c0_72 = arith.constant 0 : index
    %c0_73 = arith.constant 0 : index
    %145 = vector.load %arg9[%c0_72, %c0_73] : memref<8x128xf32, #tpu.memory_space<vmem>>, vector<8x128xf32>
    tpu.vector_store %arg9[%c0_72, %c0_73], %144 {strides = array<i32>} : memref<8x128xf32, #tpu.memory_space<vmem>>, vector<8x128xf32>,
    %c0_74 = arith.constant 0 : index
    %c0_75 = arith.constant 0 : index
    %146 = vector.load %arg9[%c0_74, %c0_75] : memref<8x128xf32, #tpu.memory_space<vmem>>, vector<8x128xf32>
    %c4 = arith.constant 4 : index
    %c0_76 = arith.constant 0 : index
    %c0_77 = arith.constant 0 : index
    %147 = vector.load %arg8[%c4, %c0_76, %c0_77] : memref<8x8x512xf32, #tpu.memory_space<vmem>>, vector<1x8x512xf32>
    %148 = vector.shape_cast %147 : vector<1x8x512xf32> to vector<8x512xf32>
    %cst_78 = arith.constant dense<0.000000e+00> : vector<8x512xf32>
    %149 = tpu.matmul %146, %1, %cst_78 {dimension_numbers = #tpu.dot_dimension_numbers<[1], [0], [0], [1], [0, 0, 1, 1], [], []>} : vector<8x128xf32>, vector<128x512xf32>, vector<8x512xf32> -> vector<8x512xf32>
    %150 = arith.addf %148, %149 : vector<8x512xf32>
    %151 = vector.extract_strided_slice %150 {offsets = [0, 0], sizes = [8, 128], strides = [1, 1]} : vector<8x512xf32> to vector<8x128xf32>
    %152 = arith.negf %151 : vector<8x128xf32>
    %153 = math.exp %152 : vector<8x128xf32>
    %cst_79 = arith.constant 1.000000e+00 : f32
    %154 = vector.broadcast %cst_79 : f32 to vector<8x128xf32>
    %155 = arith.addf %154, %153 : vector<8x128xf32>
    %156 = arith.divf %154, %155 : vector<8x128xf32>
    %157 = vector.extract_strided_slice %150 {offsets = [0, 128], sizes = [8, 128], strides = [1, 1]} : vector<8x512xf32> to vector<8x128xf32>
    %158 = arith.negf %157 : vector<8x128xf32>
    %159 = math.exp %158 : vector<8x128xf32>
    %cst_80 = arith.constant 1.000000e+00 : f32
    %160 = vector.broadcast %cst_80 : f32 to vector<8x128xf32>
    %161 = arith.addf %160, %159 : vector<8x128xf32>
    %162 = arith.divf %160, %161 : vector<8x128xf32>
    %163 = vector.extract_strided_slice %150 {offsets = [0, 256], sizes = [8, 128], strides = [1, 1]} : vector<8x512xf32> to vector<8x128xf32>
    %164 = math.tanh %163 : vector<8x128xf32>
    %165 = vector.extract_strided_slice %150 {offsets = [0, 384], sizes = [8, 128], strides = [1, 1]} : vector<8x512xf32> to vector<8x128xf32>
    %166 = arith.negf %165 : vector<8x128xf32>
    %167 = math.exp %166 : vector<8x128xf32>
    %cst_81 = arith.constant 1.000000e+00 : f32
    %168 = vector.broadcast %cst_81 : f32 to vector<8x128xf32>
    %169 = arith.addf %168, %167 : vector<8x128xf32>
    %170 = arith.divf %168, %169 : vector<8x128xf32>
    %c0_82 = arith.constant 0 : index
    %c0_83 = arith.constant 0 : index
    %171 = vector.load %arg10[%c0_82, %c0_83] : memref<8x128xf32, #tpu.memory_space<vmem>>, vector<8x128xf32>
    %172 = arith.mulf %162, %171 : vector<8x128xf32>
    %173 = arith.mulf %156, %164 : vector<8x128xf32>
    %174 = arith.addf %172, %173 : vector<8x128xf32>
    %c0_84 = arith.constant 0 : index
    %c0_85 = arith.constant 0 : index
    %175 = vector.load %arg10[%c0_84, %c0_85] : memref<8x128xf32, #tpu.memory_space<vmem>>, vector<8x128xf32>
    tpu.vector_store %arg10[%c0_84, %c0_85], %174 {strides = array<i32>} : memref<8x128xf32, #tpu.memory_space<vmem>>, vector<8x128xf32>,
    %176 = math.tanh %174 : vector<8x128xf32>
    %177 = arith.mulf %170, %176 : vector<8x128xf32>
    %c0_86 = arith.constant 0 : index
    %c0_87 = arith.constant 0 : index
    %178 = vector.load %arg9[%c0_86, %c0_87] : memref<8x128xf32, #tpu.memory_space<vmem>>, vector<8x128xf32>
    tpu.vector_store %arg9[%c0_86, %c0_87], %177 {strides = array<i32>} : memref<8x128xf32, #tpu.memory_space<vmem>>, vector<8x128xf32>,
    %c0_88 = arith.constant 0 : index
    %c0_89 = arith.constant 0 : index
    %179 = vector.load %arg9[%c0_88, %c0_89] : memref<8x128xf32, #tpu.memory_space<vmem>>, vector<8x128xf32>
    %c5 = arith.constant 5 : index
    %c0_90 = arith.constant 0 : index
    %c0_91 = arith.constant 0 : index
    %180 = vector.load %arg8[%c5, %c0_90, %c0_91] : memref<8x8x512xf32, #tpu.memory_space<vmem>>, vector<1x8x512xf32>
    %181 = vector.shape_cast %180 : vector<1x8x512xf32> to vector<8x512xf32>
    %cst_92 = arith.constant dense<0.000000e+00> : vector<8x512xf32>
    %182 = tpu.matmul %179, %1, %cst_92 {dimension_numbers = #tpu.dot_dimension_numbers<[1], [0], [0], [1], [0, 0, 1, 1], [], []>} : vector<8x128xf32>, vector<128x512xf32>, vector<8x512xf32> -> vector<8x512xf32>
    %183 = arith.addf %181, %182 : vector<8x512xf32>
    %184 = vector.extract_strided_slice %183 {offsets = [0, 0], sizes = [8, 128], strides = [1, 1]} : vector<8x512xf32> to vector<8x128xf32>
    %185 = arith.negf %184 : vector<8x128xf32>
    %186 = math.exp %185 : vector<8x128xf32>
    %cst_93 = arith.constant 1.000000e+00 : f32
    %187 = vector.broadcast %cst_93 : f32 to vector<8x128xf32>
    %188 = arith.addf %187, %186 : vector<8x128xf32>
    %189 = arith.divf %187, %188 : vector<8x128xf32>
    %190 = vector.extract_strided_slice %183 {offsets = [0, 128], sizes = [8, 128], strides = [1, 1]} : vector<8x512xf32> to vector<8x128xf32>
    %191 = arith.negf %190 : vector<8x128xf32>
    %192 = math.exp %191 : vector<8x128xf32>
    %cst_94 = arith.constant 1.000000e+00 : f32
    %193 = vector.broadcast %cst_94 : f32 to vector<8x128xf32>
    %194 = arith.addf %193, %192 : vector<8x128xf32>
    %195 = arith.divf %193, %194 : vector<8x128xf32>
    %196 = vector.extract_strided_slice %183 {offsets = [0, 256], sizes = [8, 128], strides = [1, 1]} : vector<8x512xf32> to vector<8x128xf32>
    %197 = math.tanh %196 : vector<8x128xf32>
    %198 = vector.extract_strided_slice %183 {offsets = [0, 384], sizes = [8, 128], strides = [1, 1]} : vector<8x512xf32> to vector<8x128xf32>
    %199 = arith.negf %198 : vector<8x128xf32>
    %200 = math.exp %199 : vector<8x128xf32>
    %cst_95 = arith.constant 1.000000e+00 : f32
    %201 = vector.broadcast %cst_95 : f32 to vector<8x128xf32>
    %202 = arith.addf %201, %200 : vector<8x128xf32>
    %203 = arith.divf %201, %202 : vector<8x128xf32>
    %c0_96 = arith.constant 0 : index
    %c0_97 = arith.constant 0 : index
    %204 = vector.load %arg10[%c0_96, %c0_97] : memref<8x128xf32, #tpu.memory_space<vmem>>, vector<8x128xf32>
    %205 = arith.mulf %195, %204 : vector<8x128xf32>
    %206 = arith.mulf %189, %197 : vector<8x128xf32>
    %207 = arith.addf %205, %206 : vector<8x128xf32>
    %c0_98 = arith.constant 0 : index
    %c0_99 = arith.constant 0 : index
    %208 = vector.load %arg10[%c0_98, %c0_99] : memref<8x128xf32, #tpu.memory_space<vmem>>, vector<8x128xf32>
    tpu.vector_store %arg10[%c0_98, %c0_99], %207 {strides = array<i32>} : memref<8x128xf32, #tpu.memory_space<vmem>>, vector<8x128xf32>,
    %209 = math.tanh %207 : vector<8x128xf32>
    %210 = arith.mulf %203, %209 : vector<8x128xf32>
    %c0_100 = arith.constant 0 : index
    %c0_101 = arith.constant 0 : index
    %211 = vector.load %arg9[%c0_100, %c0_101] : memref<8x128xf32, #tpu.memory_space<vmem>>, vector<8x128xf32>
    tpu.vector_store %arg9[%c0_100, %c0_101], %210 {strides = array<i32>} : memref<8x128xf32, #tpu.memory_space<vmem>>, vector<8x128xf32>,
    %c0_102 = arith.constant 0 : index
    %c0_103 = arith.constant 0 : index
    %212 = vector.load %arg9[%c0_102, %c0_103] : memref<8x128xf32, #tpu.memory_space<vmem>>, vector<8x128xf32>
    %c6 = arith.constant 6 : index
    %c0_104 = arith.constant 0 : index
    %c0_105 = arith.constant 0 : index
    %213 = vector.load %arg8[%c6, %c0_104, %c0_105] : memref<8x8x512xf32, #tpu.memory_space<vmem>>, vector<1x8x512xf32>
    %214 = vector.shape_cast %213 : vector<1x8x512xf32> to vector<8x512xf32>
    %cst_106 = arith.constant dense<0.000000e+00> : vector<8x512xf32>
    %215 = tpu.matmul %212, %1, %cst_106 {dimension_numbers = #tpu.dot_dimension_numbers<[1], [0], [0], [1], [0, 0, 1, 1], [], []>} : vector<8x128xf32>, vector<128x512xf32>, vector<8x512xf32> -> vector<8x512xf32>
    %216 = arith.addf %214, %215 : vector<8x512xf32>
    %217 = vector.extract_strided_slice %216 {offsets = [0, 0], sizes = [8, 128], strides = [1, 1]} : vector<8x512xf32> to vector<8x128xf32>
    %218 = arith.negf %217 : vector<8x128xf32>
    %219 = math.exp %218 : vector<8x128xf32>
    %cst_107 = arith.constant 1.000000e+00 : f32
    %220 = vector.broadcast %cst_107 : f32 to vector<8x128xf32>
    %221 = arith.addf %220, %219 : vector<8x128xf32>
    %222 = arith.divf %220, %221 : vector<8x128xf32>
    %223 = vector.extract_strided_slice %216 {offsets = [0, 128], sizes = [8, 128], strides = [1, 1]} : vector<8x512xf32> to vector<8x128xf32>
    %224 = arith.negf %223 : vector<8x128xf32>
    %225 = math.exp %224 : vector<8x128xf32>
    %cst_108 = arith.constant 1.000000e+00 : f32
    %226 = vector.broadcast %cst_108 : f32 to vector<8x128xf32>
    %227 = arith.addf %226, %225 : vector<8x128xf32>
    %228 = arith.divf %226, %227 : vector<8x128xf32>
    %229 = vector.extract_strided_slice %216 {offsets = [0, 256], sizes = [8, 128], strides = [1, 1]} : vector<8x512xf32> to vector<8x128xf32>
    %230 = math.tanh %229 : vector<8x128xf32>
    %231 = vector.extract_strided_slice %216 {offsets = [0, 384], sizes = [8, 128], strides = [1, 1]} : vector<8x512xf32> to vector<8x128xf32>
    %232 = arith.negf %231 : vector<8x128xf32>
    %233 = math.exp %232 : vector<8x128xf32>
    %cst_109 = arith.constant 1.000000e+00 : f32
    %234 = vector.broadcast %cst_109 : f32 to vector<8x128xf32>
    %235 = arith.addf %234, %233 : vector<8x128xf32>
    %236 = arith.divf %234, %235 : vector<8x128xf32>
    %c0_110 = arith.constant 0 : index
    %c0_111 = arith.constant 0 : index
    %237 = vector.load %arg10[%c0_110, %c0_111] : memref<8x128xf32, #tpu.memory_space<vmem>>, vector<8x128xf32>
    %238 = arith.mulf %228, %237 : vector<8x128xf32>
    %239 = arith.mulf %222, %230 : vector<8x128xf32>
    %240 = arith.addf %238, %239 : vector<8x128xf32>
    %c0_112 = arith.constant 0 : index
    %c0_113 = arith.constant 0 : index
    %241 = vector.load %arg10[%c0_112, %c0_113] : memref<8x128xf32, #tpu.memory_space<vmem>>, vector<8x128xf32>
    tpu.vector_store %arg10[%c0_112, %c0_113], %240 {strides = array<i32>} : memref<8x128xf32, #tpu.memory_space<vmem>>, vector<8x128xf32>,
    %242 = math.tanh %240 : vector<8x128xf32>
    %243 = arith.mulf %236, %242 : vector<8x128xf32>
    %c0_114 = arith.constant 0 : index
    %c0_115 = arith.constant 0 : index
    %244 = vector.load %arg9[%c0_114, %c0_115] : memref<8x128xf32, #tpu.memory_space<vmem>>, vector<8x128xf32>
    tpu.vector_store %arg9[%c0_114, %c0_115], %243 {strides = array<i32>} : memref<8x128xf32, #tpu.memory_space<vmem>>, vector<8x128xf32>,
    %c0_116 = arith.constant 0 : index
    %c0_117 = arith.constant 0 : index
    %245 = vector.load %arg9[%c0_116, %c0_117] : memref<8x128xf32, #tpu.memory_space<vmem>>, vector<8x128xf32>
    %c7 = arith.constant 7 : index
    %c0_118 = arith.constant 0 : index
    %c0_119 = arith.constant 0 : index
    %246 = vector.load %arg8[%c7, %c0_118, %c0_119] : memref<8x8x512xf32, #tpu.memory_space<vmem>>, vector<1x8x512xf32>
    %247 = vector.shape_cast %246 : vector<1x8x512xf32> to vector<8x512xf32>
    %cst_120 = arith.constant dense<0.000000e+00> : vector<8x512xf32>
    %248 = tpu.matmul %245, %1, %cst_120 {dimension_numbers = #tpu.dot_dimension_numbers<[1], [0], [0], [1], [0, 0, 1, 1], [], []>} : vector<8x128xf32>, vector<128x512xf32>, vector<8x512xf32> -> vector<8x512xf32>
    %249 = arith.addf %247, %248 : vector<8x512xf32>
    %250 = vector.extract_strided_slice %249 {offsets = [0, 0], sizes = [8, 128], strides = [1, 1]} : vector<8x512xf32> to vector<8x128xf32>
    %251 = arith.negf %250 : vector<8x128xf32>
    %252 = math.exp %251 : vector<8x128xf32>
    %cst_121 = arith.constant 1.000000e+00 : f32
    %253 = vector.broadcast %cst_121 : f32 to vector<8x128xf32>
    %254 = arith.addf %253, %252 : vector<8x128xf32>
    %255 = arith.divf %253, %254 : vector<8x128xf32>
    %256 = vector.extract_strided_slice %249 {offsets = [0, 128], sizes = [8, 128], strides = [1, 1]} : vector<8x512xf32> to vector<8x128xf32>
    %257 = arith.negf %256 : vector<8x128xf32>
    %258 = math.exp %257 : vector<8x128xf32>
    %cst_122 = arith.constant 1.000000e+00 : f32
    %259 = vector.broadcast %cst_122 : f32 to vector<8x128xf32>
    %260 = arith.addf %259, %258 : vector<8x128xf32>
    %261 = arith.divf %259, %260 : vector<8x128xf32>
    %262 = vector.extract_strided_slice %249 {offsets = [0, 256], sizes = [8, 128], strides = [1, 1]} : vector<8x512xf32> to vector<8x128xf32>
    %263 = math.tanh %262 : vector<8x128xf32>
    %264 = vector.extract_strided_slice %249 {offsets = [0, 384], sizes = [8, 128], strides = [1, 1]} : vector<8x512xf32> to vector<8x128xf32>
    %265 = arith.negf %264 : vector<8x128xf32>
    %266 = math.exp %265 : vector<8x128xf32>
    %cst_123 = arith.constant 1.000000e+00 : f32
    %267 = vector.broadcast %cst_123 : f32 to vector<8x128xf32>
    %268 = arith.addf %267, %266 : vector<8x128xf32>
    %269 = arith.divf %267, %268 : vector<8x128xf32>
    %c0_124 = arith.constant 0 : index
    %c0_125 = arith.constant 0 : index
    %270 = vector.load %arg10[%c0_124, %c0_125] : memref<8x128xf32, #tpu.memory_space<vmem>>, vector<8x128xf32>
    %271 = arith.mulf %261, %270 : vector<8x128xf32>
    %272 = arith.mulf %255, %263 : vector<8x128xf32>
    %273 = arith.addf %271, %272 : vector<8x128xf32>
    %c0_126 = arith.constant 0 : index
    %c0_127 = arith.constant 0 : index
    %274 = vector.load %arg10[%c0_126, %c0_127] : memref<8x128xf32, #tpu.memory_space<vmem>>, vector<8x128xf32>
    tpu.vector_store %arg10[%c0_126, %c0_127], %273 {strides = array<i32>} : memref<8x128xf32, #tpu.memory_space<vmem>>, vector<8x128xf32>,
    %275 = math.tanh %273 : vector<8x128xf32>
    %276 = arith.mulf %269, %275 : vector<8x128xf32>
    %c0_128 = arith.constant 0 : index
    %c0_129 = arith.constant 0 : index
    %277 = vector.load %arg9[%c0_128, %c0_129] : memref<8x128xf32, #tpu.memory_space<vmem>>, vector<8x128xf32>
    tpu.vector_store %arg9[%c0_128, %c0_129], %276 {strides = array<i32>} : memref<8x128xf32, #tpu.memory_space<vmem>>, vector<8x128xf32>,
    %c0_130 = arith.constant 0 : index
    %c0_131 = arith.constant 0 : index
    %278 = vector.load %arg5[%c0_130, %c0_131] : memref<128x128xf32, #tpu.memory_space<vmem>>, vector<128x128xf32>
    %c0_132 = arith.constant 0 : index
    %c0_133 = arith.constant 0 : index
    %279 = vector.load %arg9[%c0_132, %c0_133] : memref<8x128xf32, #tpu.memory_space<vmem>>, vector<8x128xf32>
    %cst_134 = arith.constant dense<0.000000e+00> : vector<8x128xf32>
    %280 = tpu.matmul %279, %278, %cst_134 {dimension_numbers = #tpu.dot_dimension_numbers<[1], [0], [0], [1], [0, 0, 1, 1], [], []>} : vector<8x128xf32>, vector<128x128xf32>, vector<8x128xf32> -> vector<8x128xf32>
    %c0_135 = arith.constant 0 : index
    %c0_136 = arith.constant 0 : index
    %281 = vector.load %arg6[%c0_135, %c0_136] : memref<1x128xf32, #tpu.memory_space<vmem>>, vector<1x128xf32>
    %282 = vector.broadcast %281 : vector<1x128xf32> to vector<8x128xf32>
    %283 = arith.addf %280, %282 : vector<8x128xf32>
    %c0_137 = arith.constant 0 : index
    %c0_138 = arith.constant 0 : index
    %284 = vector.load %arg7[%c0_137, %c0_138] : memref<8x128xf32, #tpu.memory_space<vmem>>, vector<8x128xf32>
    tpu.vector_store %arg7[%c0_137, %c0_138], %283 {strides = array<i32>} : memref<8x128xf32, #tpu.memory_space<vmem>>, vector<8x128xf32>,
    return
  }
  func.func @transform_0(%arg0: i32) -> (i32, i32, i32) {
    %c0_i32 = arith.constant 0 : i32
    %c0_i32_0 = arith.constant 0 : i32
    %c0_i32_1 = arith.constant 0 : i32
    return %c0_i32, %arg0, %c0_i32_0 : i32, i32, i32
  }
  func.func @transform_1(%arg0: i32) -> (i32, i32) {
    %c0_i32 = arith.constant 0 : i32
    %c0_i32_0 = arith.constant 0 : i32
    %c0_i32_1 = arith.constant 0 : i32
    return %c0_i32, %c0_i32_0 : i32, i32
  }
  func.func @transform_2(%arg0: i32) -> (i32, i32) {
    %c0_i32 = arith.constant 0 : i32
    %c0_i32_0 = arith.constant 0 : i32
    %c0_i32_1 = arith.constant 0 : i32
    return %c0_i32, %c0_i32_0 : i32, i32
  }
  func.func @transform_3(%arg0: i32) -> (i32, i32) {
    %c0_i32 = arith.constant 0 : i32
    %c0_i32_0 = arith.constant 0 : i32
    %c0_i32_1 = arith.constant 0 : i32
    return %c0_i32, %c0_i32_0 : i32, i32
  }
  func.func @transform_4(%arg0: i32) -> (i32, i32) {
    %c0_i32 = arith.constant 0 : i32
    %c0_i32_0 = arith.constant 0 : i32
    %c0_i32_1 = arith.constant 0 : i32
    return %c0_i32, %c0_i32_0 : i32, i32
  }
  func.func @transform_5(%arg0: i32) -> (i32, i32) {
    %c0_i32 = arith.constant 0 : i32
    %c0_i32_0 = arith.constant 0 : i32
    %c0_i32_1 = arith.constant 0 : i32
    return %c0_i32, %c0_i32_0 : i32, i32
  }
  func.func @transform_6(%arg0: i32) -> (i32, i32) {
    %c0_i32 = arith.constant 0 : i32
    %c0_i32_0 = arith.constant 0 : i32
    return %arg0, %c0_i32 : i32, i32
  }
}

</mosaic_0001>

<bundles_post_ra>
// kernel: tpu_custom_call.1
= control target key start
LH: loop header
LB: loop body
LE: loop exit
PB: predicated region body
PF: predicated region fallthrough
CT: control target
= control target key end

     0   :  { %11 = vsyncpa [#allocation6], 0  ;;  %s3624_s0 = inlined_call_operand.hbm [shape: f32[8,8,16], index: 0, kind: input, shape index: {}]   ;;  %s3625_s1 = inlined_call_operand.hbm [shape: f32[16,512], index: 1, kind: input, shape index: {}]   ;;  %s3626_s2 = inlined_call_operand.hbm [shape: f32[128,512], index: 2, kind: input, shape index: {}]   ;;  %s3627_s3 = inlined_call_operand.hbm [shape: f32[1,512], index: 3, kind: input, shape index: {}]   ;;  %s3628_s4 = inlined_call_operand.hbm [shape: f32[128,128], index: 4, kind: input, shape index: {}]   ;;  %s3629_s5 = inlined_call_operand.hbm [shape: f32[1,128], index: 5, kind: input, shape index: {}]   ;;  %s3630_s6 = inlined_call_operand.hbm [shape: f32[8,128], index: 6, kind: output, shape index: {}]  }
   0x1   :  { %12 = vsyncpa [#allocation9], 0 }
   0x2   :  { %13 = vsyncpa [#allocation12], 0 }
   0x3   :  { %14 = vsyncpa [#allocation15], 0 }
   0x4   :  { %15 = vsyncpa [#allocation7], 0  ;;  %s3040_s21 = smov [#allocation8]   ;;  %s2876_s25 = scalar_lea.hbm %s3625_s1, 1024 }
   0x5   :  { %s33_s22 = sshll.u32 %s3040_s21, 4  ;;  %p2877_p0 = scmp.ne.s32.totalorder %s3625_s1, %s2876_s25  ;;  %s34_s22 = int_to_ptr.vmem [resolvable:$true] %s33_s22 }
   0x6   :  { %p2880_p1 = scmp.lt.u32.totalorder %s2876_s25, %s3625_s1 }
   0x8   :  { %p2882_p2 = pnand %p2880_p1, %p2877_p0 }
   0xa   :  { %2885 = shalt.err (!%p2882_p2)
}
   0xb   :  { %s2886_s30 = scalar_lea.vmem %s34_s22, 1024  ;;  %p2891_p4 = scmp.lt.s32.totalorder %s34_s22, %s34_s22 }
   0xc   :  { %p2887_p3 = scmp.ne.s32.totalorder %s34_s22, %s2886_s30  ;;  %p2892_p5 = scmp.lt.s32.totalorder %s2886_s30, %s2886_s30 }
   0xe   :  { %p2893_p6 = por %p2892_p5, %p2891_p4 }
  0x10   :  { %p2894_p7 = pnand %p2893_p6, %p2887_p3 }
  0x12   :  { %2897 = shalt.err (!%p2894_p7)
}
  0x13   :  { %s3041_s7 = smov 512   ;;  %s3042_s8 = smov 32  }
  0x14   :  { %39 = dma.hbm_to_vmem [thread:$0]  %s3625_s1, 1024, %s34_s22, [#allocation9], %s3041_s7, %s3041_s7, %s3042_s8  }
  0x15   :  { %s3043_s11 = smov [#allocation11]   ;;  %s3044_s13 = smov [#allocation5]  }
  0x16   :  { %s58_s12 = sshll.u32 %s3043_s11, 4  ;;  %s21_s14 = sshll.u32 %s3044_s13, 4  ;;  %s59_s12 = int_to_ptr.vmem [resolvable:$true] %s58_s12  ;;  %s22_s14 = int_to_ptr.vmem [resolvable:$true] %s21_s14 }
  0x17   :  { %s2898_s17 = scalar_lea.hbm %s3627_s3, 64 }
  0x18   :  { %p2899_p8 = scmp.ne.s32.totalorder %s3627_s3, %s2898_s17  ;;  %p2902_p9 = scmp.lt.u32.totalorder %s2898_s17, %s3627_s3 }
  0x1a   :  { %p2904_p10 = pnand %p2902_p9, %p2899_p8 }
  0x1c   :  { %2907 = shalt.err (!%p2904_p10)
}
  0x1d   :  { %s2908_s1 = scalar_lea.vmem %s59_s12, 64  ;;  %p2913_p12 = scmp.lt.s32.totalorder %s59_s12, %s59_s12 }
  0x1e   :  { %p2909_p11 = scmp.ne.s32.totalorder %s59_s12, %s2908_s1  ;;  %p2914_p13 = scmp.lt.s32.totalorder %s2908_s1, %s2908_s1 }
  0x20   :  { %p2915_p0 = por %p2914_p13, %p2913_p12 }
  0x22   :  { %p2916_p1 = pnand %p2915_p0, %p2909_p11 }
  0x24   :  { %2919 = shalt.err (!%p2916_p1)
}
  0x25   :  { %61 = dma.hbm_to_vmem [thread:$0]  %s3627_s3, 64, %s59_s12, [#allocation12]  }
  0x26   :  { %s2920_s26 = scalar_lea.hbm %s3624_s0, 1024 }
  0x27   :  { %p2921_p2 = scmp.ne.s32.totalorder %s3624_s0, %s2920_s26  ;;  %p2924_p3 = scmp.lt.u32.totalorder %s2920_s26, %s3624_s0 }
  0x29   :  { %p2926_p4 = pnand %p2924_p3, %p2921_p2 }
  0x2b   :  { %2929 = shalt.err (!%p2926_p4)
}
  0x2c   :  { %s2930_s9 = scalar_lea.vmem %s22_s14, 1024  ;;  %p2935_p6 = scmp.lt.s32.totalorder %s22_s14, %s22_s14 }
  0x2d   :  { %p2931_p5 = scmp.ne.s32.totalorder %s22_s14, %s2930_s9  ;;  %p2936_p7 = scmp.lt.s32.totalorder %s2930_s9, %s2930_s9 }
  0x2f   :  { %p2937_p8 = por %p2936_p7, %p2935_p6 }
  0x31   :  { %p2938_p9 = pnand %p2937_p8, %p2931_p5 }
  0x33   :  { %2941 = shalt.err (!%p2938_p9)
}
  0x34   :  { %s3045_s3 = smov 128   ;;  %s3046_s10 = smov 8  }
  0x35   :  { %27 = dma.hbm_to_vmem [thread:$0]  %s3624_s0, 1024, %s22_s14, [#allocation6], %s3045_s3, %s3045_s3, %s3046_s10  }
  0x36   :  { %s3047_s13 = smov [#allocation10]   ;;  %s3048_s16 = smov [#allocation13]  }
  0x37   :  { %s45_s15 = sshll.u32 %s3047_s13, 4  ;;  %s67_s17 = sshll.u32 %s3048_s16, 4  ;;  %s46_s15 = int_to_ptr.vmem [resolvable:$true] %s45_s15  ;;  %s68_s17 = int_to_ptr.vmem [resolvable:$true] %s67_s17 }
  0x38   :  { %s2942_s20 = scalar_lea.hbm %s3626_s2, 8192 }
  0x39   :  { %p2943_p10 = scmp.ne.s32.totalorder %s3626_s2, %s2942_s20  ;;  %p2946_p11 = scmp.lt.u32.totalorder %s2942_s20, %s3626_s2 }
  0x3b   :  { %p2948_p12 = pnand %p2946_p11, %p2943_p10 }
  0x3d   :  { %2951 = shalt.err (!%p2948_p12)
}
  0x3e   :  { %s2952_s0 = scalar_lea.vmem %s46_s15, 8192  ;;  %p2957_p0 = scmp.lt.s32.totalorder %s46_s15, %s46_s15 }
  0x3f   :  { %p2953_p13 = scmp.ne.s32.totalorder %s46_s15, %s2952_s0  ;;  %p2958_p1 = scmp.lt.s32.totalorder %s2952_s0, %s2952_s0 }
  0x41   :  { %p2959_p2 = por %p2958_p1, %p2957_p0 }
  0x43   :  { %p2960_p3 = pnand %p2959_p2, %p2953_p13 }
  0x45   :  { %2963 = shalt.err (!%p2960_p3)
}
  0x46   :  { %51 = dma.hbm_to_vmem [thread:$0]  %s3626_s2, 8192, %s46_s15, [#allocation9], %s3041_s7, %s3041_s7, %s3042_s8  }
  0x47   :  { %s2964_s27 = scalar_lea.hbm %s3628_s4, 2048 }
  0x48   :  { %p2965_p4 = scmp.ne.s32.totalorder %s3628_s4, %s2964_s27  ;;  %p2968_p5 = scmp.lt.u32.totalorder %s2964_s27, %s3628_s4 }
  0x4a   :  { %p2970_p6 = pnand %p2968_p5, %p2965_p4 }
  0x4c   :  { %2973 = shalt.err (!%p2970_p6)
}
  0x4d   :  { %s2974_s11 = scalar_lea.vmem %s68_s17, 2048  ;;  %p2979_p8 = scmp.lt.s32.totalorder %s68_s17, %s68_s17 }
  0x4e   :  { %p2975_p7 = scmp.ne.s32.totalorder %s68_s17, %s2974_s11  ;;  %p2980_p9 = scmp.lt.s32.totalorder %s2974_s11, %s2974_s11 }
  0x50   :  { %p2981_p10 = por %p2980_p9, %p2979_p8 }
  0x52   :  { %p2982_p11 = pnand %p2981_p10, %p2975_p7 }
  0x54   :  { %2985 = shalt.err (!%p2982_p11)
}
  0x55   :  { %73 = dma.hbm_to_vmem [thread:$0]  %s3628_s4, 2048, %s68_s17, [#allocation12], %s3045_s3, %s3045_s3, %s3046_s10  }
  0x56   :  { %s3049_s8 = smov [#allocation14]   ;;  %s2986_s16 = scalar_lea.hbm %s3629_s5, 16 }
  0x57   :  { %s80_s12 = sshll.u32 %s3049_s8, 4  ;;  %p2987_p12 = scmp.ne.s32.totalorder %s3629_s5, %s2986_s16  ;;  %s81_s12 = int_to_ptr.vmem [resolvable:$true] %s80_s12 }
  0x58   :  { %p2990_p13 = scmp.lt.u32.totalorder %s2986_s16, %s3629_s5 }
  0x5a   :  { %p2992_p0 = pnand %p2990_p13, %p2987_p12 }
  0x5c   :  { %2995 = shalt.err (!%p2992_p0)
}
  0x5d   :  { %s2996_s1 = scalar_lea.vmem %s81_s12, 16  ;;  %s3000_s4 = scalar_lea.vmem %s81_s12, 32 }
  0x5e   :  { %p2997_p1 = scmp.ne.s32.totalorder %s81_s12, %s2996_s1  ;;  %p3001_p2 = scmp.lt.s32.totalorder %s81_s12, %s81_s12 }
  0x5f   :  { %p3002_p3 = scmp.lt.s32.totalorder %s3000_s4, %s2996_s1 }
  0x61   :  { %p3003_p4 = por %p3002_p3, %p3001_p2 }
  0x63   :  { %p3004_p5 = pnand %p3003_p4, %p2997_p1 }
  0x65   :  { %3007 = shalt.err (!%p3004_p5)
}
  0x66   :  { %83 = dma.hbm_to_vmem [thread:$0]  %s3629_s5, 16, %s81_s12, [#allocation15]  }
  0x67   :  { %3030 = dma.done.wait [#allocation6], 1024  }
  0x68   :  { %3031 = vsyncadd [#allocation6], 4294966272 }
  0x69   :  { %3032 = dma.done.wait [#allocation9], 9216  }
  0x6a   :  { %3033 = vsyncadd [#allocation9], 4294958080 }
  0x6b   :  { %3034 = dma.done.wait [#allocation12], 2112  }
  0x6c   :  { %3035 = vsyncadd [#allocation12], 4294965184 }
  0x6d   :  { %3036 = dma.done.wait [#allocation15], 16  }
  0x6e   :  { %3037 = vsyncadd [#allocation15], 4294967280  ;;  %v3050_v0 = vmov 0.0   ;;  %v103_v1 = vld [vmem:[#allocation8 + $0x8] sm:$0xff]  ;;  %v105_v3 = vld [vmem:[#allocation8 + $0x18] sm:$0xff]  ;;  %vm204_vm0 = vcmask 130048  }
  0x6f   :  { %293 = vmatprep.mubr.f32.mxu0 %v3050_v0  ;;  %406 = vmatprep.mubr.f32.mxu1 %v3050_v0  ;;  %v107_v2 = vld [vmem:[#allocation8 + $0x28] sm:$0xff]  ;;  %v109_v5 = vld [vmem:[#allocation8 + $0x38] sm:$0xff]  ;;  %v102_v6 = vld [vmem:[#allocation8] sm:$0xff]  ;;  %vm3052_vm1 = vmmov 0   ;;  %s3053_s5 = smov [#allocation16]  }
  0x70   :  { %v2126_v4 = vpack.c.bf16 %v107_v2, %v103_v1  ;;  %v106_v7 = vld [vmem:[#allocation8 + $0x20] sm:$0xff]  ;;  %v2130_v8 = vpack.c.bf16 %v109_v5, %v105_v3  ;;  %v104_v10 = vld [vmem:[#allocation8 + $0x10] sm:$0xff]  ;;  %v111_v14 = vld [vmem:[#allocation10 + $0x8] sm:$0xff]  ;;  %s2021_s17 = sshll.u32 %s3053_s5, 4  ;;  %s2022_s17 = int_to_ptr.vmem [resolvable:$true] %s2021_s17 }
  0x71   :  { %v2128_v9 = vpack.c.bf16 %v106_v7, %v102_v6  ;;  %v108_v11 = vld [vmem:[#allocation8 + $0x30] sm:$0xff]  ;;  %v174_v12 = vld [vmem:[#allocation5] sm:$0xff]  ;;  %v115_v15 = vld [vmem:[#allocation10 + $0x28] sm:$0xff]  ;;  %s3008_s22 = scalar_lea.vmem %s2022_s17, 128  ;;  %p3013_p7 = scmp.lt.s32.totalorder %s2022_s17, %s2022_s17 }
  0x72   :  { %2127 = vmatprep.subr.bf16.mxu0 %v2126_v4  ;;  %v2132_v13 = vpack.c.bf16 %v108_v11, %v104_v10  ;;  %v113_v16 = vld [vmem:[#allocation10 + $0x18] sm:$0xff]  ;;  %2131 = vmatprep.subr.bf16.mxu1 %v2130_v8  ;;  %v3175_v17 = vpack.c.bf16 %v115_v15, %v111_v14  ;;  %v110_v19 = vld [vmem:[#allocation10] sm:$0xff]  ;;  %v112_v23 = vld [vmem:[#allocation10 + $0x10] sm:$0xff]  ;;  %p3009_p6 = scmp.ne.s32.totalorder %s2022_s17, %s3008_s22  ;;  %p3014_p8 = scmp.lt.s32.totalorder %s3008_s22, %s3008_s22 }
  0x73   :  { %2129 = vmatpush1.bf16.msra.mxu0 %v2128_v9  ;;  %v117_v18 = vld [vmem:[#allocation10 + $0x38] sm:$0xff]  ;;  %v114_v20 = vld [vmem:[#allocation10 + $0x20] sm:$0xff]  ;;  %v116_v24 = vld [vmem:[#allocation10 + $0x30] sm:$0xff] }
  0x74   :  { %2133 = vmatpush1.bf16.msra.mxu1 %v2132_v13  ;;  %v3177_v21 = vpack.c.bf16 %v117_v18, %v113_v16  ;;  %v3179_v22 = vpack.c.bf16 %v114_v20, %v110_v19  ;;  %2135 = vmatprep.subr.bf16.mxu0 %v3175_v17  ;;  %v3182_v25 = vpack.c.bf16 %v116_v24, %v112_v23  ;;  %v119_v26 = vld [vmem:[#allocation10 + $0x48] sm:$0xff]  ;;  %v121_v28 = vld [vmem:[#allocation10 + $0x58] sm:$0xff]  ;;  %v118_v31 = vld [vmem:[#allocation10 + $0x40] sm:$0xff]  ;;  %p3015_p9 = por %p3014_p8, %p3013_p7 }
  0x75   :  { %v123_v27 = vld [vmem:[#allocation10 + $0x68] sm:$0xff]  ;;  %v125_v30 = vld [vmem:[#allocation10 + $0x78] sm:$0xff]  ;;  %v122_v32 = vld [vmem:[#allocation10 + $0x60] sm:$0xff] }
  0x76   :  { %2033 = vmatmul.mubr.msk.f32.vlgmr.msra.gmra.mrb[0].mxu0 %vm204_vm0, %v174_v12  ;;  %2167 = vmatprep.subr.bf16.mxu1 %v3177_v21  ;;  %v3186_v29 = vpack.c.bf16 %v123_v27, %v119_v26  ;;  %v175_v33 = vld [vmem:[#allocation5 + $0x8] sm:$0xff]  ;;  %v3190_v34 = vpack.c.bf16 %v125_v30, %v121_v28  ;;  %v3192_v35 = vpack.c.bf16 %v122_v32, %v118_v31  ;;  %v120_v36 = vld [vmem:[#allocation10 + $0x50] sm:$0xff]  ;;  %v129_v41 = vld [vmem:[#allocation10 + $0x98] sm:$0xff]  ;;  %p3016_p10 = pnand %p3015_p9, %p3009_p6 }
  0x77   :  { %2041 = vmatmul.mubr.msk.f32.vlgmr.msra.gmra.mrb[0].mxu1 %vm204_vm0, %v174_v12  ;;  %2137 = vmatpush1.bf16.msra.mxu0 %v3179_v22  ;;  %v124_v37 = vld [vmem:[#allocation10 + $0x70] sm:$0xff]  ;;  %v127_v39 = vld [vmem:[#allocation10 + $0x88] sm:$0xff]  ;;  %v133_v43 = vld [vmem:[#allocation10 + $0xb8] sm:$0xff] }
  0x78   :  { %2169 = vmatpush1.bf16.msra.mxu1 %v3182_v25  ;;  %299 = vmatprep.mubr.f32.mxu0 %v3050_v0  ;;  %v3196_v38 = vpack.c.bf16 %v124_v37, %v120_v36  ;;  %v131_v40 = vld [vmem:[#allocation10 + $0xa8] sm:$0xff]  ;;  %v126_v44 = vld [vmem:[#allocation10 + $0x80] sm:$0xff]  ;;  %v176_v46 = vld [vmem:[#allocation5 + $0x10] sm:$0xff]  ;;  %v3204_v47 = vpack.c.bf16 %v133_v43, %v129_v41 }
  0x79   :  { %412 = vmatprep.mubr.f32.mxu1 %v3050_v0  ;;  %2139 = vmatprep.subr.bf16.mxu0 %v3186_v29  ;;  %v3200_v42 = vpack.c.bf16 %v131_v40, %v127_v39  ;;  %v130_v45 = vld [vmem:[#allocation10 + $0xa0] sm:$0xff]  ;;  %v128_v48 = vld [vmem:[#allocation10 + $0x90] sm:$0xff]  ;;  %v135_v51 = vld [vmem:[#allocation10 + $0xc8] sm:$0xff] }
  0x7a   :  { %2034 = vmatmul.mubr.msk.f32.gmra.mrb[2].mxu0 %vm204_vm0, %v175_v33  ;;  %2171 = vmatprep.subr.bf16.mxu1 %v3190_v34  ;;  %v132_v49 = vld [vmem:[#allocation10 + $0xb0] sm:$0xff]  ;;  %v3208_v50 = vpack.c.bf16 %v130_v45, %v126_v44  ;;  %v139_v52 = vld [vmem:[#allocation10 + $0xe8] sm:$0xff]  ;;  %v137_v53 = vld [vmem:[#allocation10 + $0xd8] sm:$0xff] }
  0x7b   :  { %2042 = vmatmul.mubr.msk.f32.gmra.mrb[2].mxu1 %vm204_vm0, %v175_v33  ;;  %2141 = vmatpush1.bf16.msra.mxu0 %v3192_v35  ;;  %v3212_v54 = vpack.c.bf16 %v132_v49, %v128_v48  ;;  %v141_v55 = vld [vmem:[#allocation10 + $0xf8] sm:$0xff]  ;;  %v134_v56 = vld [vmem:[#allocation10 + $0xc0] sm:$0xff]  ;;  %v3216_v58 = vpack.c.bf16 %v139_v52, %v135_v51  ;;  %v136_v59 = vld [vmem:[#allocation10 + $0xd0] sm:$0xff] }
  0x7c   :  { %2173 = vmatpush1.bf16.msra.mxu1 %v3196_v38  ;;  %305 = vmatprep.mubr.f32.mxu0 %v3050_v0  ;;  %v138_v57 = vld [vmem:[#allocation10 + $0xe0] sm:$0xff]  ;;  %v140_v60 = vld [vmem:[#allocation10 + $0xf0] sm:$0xff]  ;;  %v3220_v61 = vpack.c.bf16 %v141_v55, %v137_v53  ;;  %v143_v62 = vld [vmem:[#allocation10 + $0x108] sm:$0xff] }
  0x7d   :  { %418 = vmatprep.mubr.f32.mxu1 %v3050_v0  ;;  %2143 = vmatprep.subr.bf16.mxu0 %v3200_v42  ;;  %v147_v63 = vld [vmem:[#allocation10 + $0x128] sm:$0xff]  ;;  %v177_v1 = vld [vmem:[#allocation5 + $0x18] sm:$0xff]  ;;  %v3224_v2 = vpack.c.bf16 %v138_v57, %v134_v56  ;;  %v3228_v5 = vpack.c.bf16 %v140_v60, %v136_v59  ;;  %v142_v6 = vld [vmem:[#allocation10 + $0x100] sm:$0xff] }
  0x7e   :  { %2035 = vmatmul.mubr.msk.f32.gmra.mrb[4].mxu0 %vm204_vm0, %v176_v46  ;;  %2175 = vmatprep.subr.bf16.mxu1 %v3204_v47  ;;  %v145_v3 = vld [vmem:[#allocation10 + $0x118] sm:$0xff]  ;;  %v146_v7 = vld [vmem:[#allocation10 + $0x120] sm:$0xff]  ;;  %v3232_v8 = vpack.c.bf16 %v147_v63, %v143_v62  ;;  %v144_v9 = vld [vmem:[#allocation10 + $0x110] sm:$0xff] }
  0x7f   :  { %2043 = vmatmul.mubr.msk.f32.gmra.mrb[4].mxu1 %vm204_vm0, %v176_v46  ;;  %2145 = vmatpush1.bf16.msra.mxu0 %v3208_v50  ;;  %v149_v4 = vld [vmem:[#allocation10 + $0x138] sm:$0xff]  ;;  %v148_v10 = vld [vmem:[#allocation10 + $0x130] sm:$0xff]  ;;  %v151_v12 = vld [vmem:[#allocation10 + $0x148] sm:$0xff]  ;;  %v3240_v15 = vpack.c.bf16 %v146_v7, %v142_v6  ;;  %v184_v7 = vlaneseq }
  0x80   :  { %2177 = vmatpush1.bf16.msra.mxu1 %v3212_v54  ;;  %311 = vmatprep.mubr.f32.mxu0 %v3050_v0  ;;  %v3236_v11 = vpack.c.bf16 %v149_v4, %v145_v3  ;;  %v155_v13 = vld [vmem:[#allocation10 + $0x168] sm:$0xff]  ;;  %v178_v14 = vld [vmem:[#allocation5 + $0x20] sm:$0xff]  ;;  %v153_v16 = vld [vmem:[#allocation10 + $0x158] sm:$0xff]  ;;  %v3244_v19 = vpack.c.bf16 %v148_v10, %v144_v9 }
  0x81   :  { %424 = vmatprep.mubr.f32.mxu1 %v3050_v0  ;;  %2147 = vmatprep.subr.bf16.mxu0 %v3216_v58  ;;  %v157_v18 = vld [vmem:[#allocation10 + $0x178] sm:$0xff]  ;;  %v150_v20 = vld [vmem:[#allocation10 + $0x140] sm:$0xff]  ;;  %v3248_v24 = vpack.c.bf16 %v155_v13, %v151_v12  ;;  %v152_v26 = vld [vmem:[#allocation10 + $0x150] sm:$0xff]  ;;  %v185_v9 = vshrl.u32 %v184_v7, 7 }
  0x82   :  { %2036 = vmatmul.mubr.msk.f32.gmra.mrb[6].mxu0 %vm204_vm0, %v177_v1  ;;  %2179 = vmatprep.subr.bf16.mxu1 %v3220_v61  ;;  %v154_v23 = vld [vmem:[#allocation10 + $0x160] sm:$0xff]  ;;  %v156_v27 = vld [vmem:[#allocation10 + $0x170] sm:$0xff]  ;;  %v3252_v28 = vpack.c.bf16 %v157_v18, %v153_v16  ;;  %v159_v30 = vld [vmem:[#allocation10 + $0x188] sm:$0xff] }
  0x83   :  { %2044 = vmatmul.mubr.msk.f32.gmra.mrb[6].mxu1 %vm204_vm0, %v177_v1  ;;  %2149 = vmatpush1.bf16.msra.mxu0 %v3224_v2  ;;  %v163_v31 = vld [vmem:[#allocation10 + $0x1a8] sm:$0xff]  ;;  %v3256_v33 = vpack.c.bf16 %v154_v23, %v150_v20  ;;  %v161_v36 = vld [vmem:[#allocation10 + $0x198] sm:$0xff]  ;;  %v3260_v39 = vpack.c.bf16 %v156_v27, %v152_v26  ;;  %v158_v40 = vld [vmem:[#allocation10 + $0x180] sm:$0xff]  ;;  %v186_v10 = vsub.s32 0, %v185_v9  ;;  %v190_v13 = vsub.s32 1, %v185_v9 }
  0x84   :  { %2181 = vmatpush1.bf16.msra.mxu1 %v3228_v5  ;;  %317 = vmatprep.mubr.f32.mxu0 %v3050_v0  ;;  %v179_v32 = vld [vmem:[#allocation5 + $0x28] sm:$0xff]  ;;  %v165_v37 = vld [vmem:[#allocation10 + $0x1b8] sm:$0xff]  ;;  %v162_v41 = vld [vmem:[#allocation10 + $0x1a0] sm:$0xff]  ;;  %v3264_v43 = vpack.c.bf16 %v163_v31, %v159_v30  ;;  %v198_v20 = vsub.s32 3, %v185_v9 }
  0x85   :  { %430 = vmatprep.mubr.f32.mxu1 %v3050_v0  ;;  %2151 = vmatprep.subr.bf16.mxu0 %v3232_v8  ;;  %v160_v44 = vld [vmem:[#allocation10 + $0x190] sm:$0xff]  ;;  %v3268_v46 = vpack.c.bf16 %v165_v37, %v161_v36  ;;  %v167_v48 = vld [vmem:[#allocation10 + $0x1c8] sm:$0xff]  ;;  %v3272_v52 = vpack.c.bf16 %v162_v41, %v158_v40  ;;  %v169_v53 = vld [vmem:[#allocation10 + $0x1d8] sm:$0xff]  ;;  %v194_v40 = vsub.s32 2, %v185_v9 }
  0x86   :  { %2037 = vmatmul.mubr.msk.f32.gmra.mrb[8].mxu0 %vm204_vm0, %v178_v14  ;;  %2183 = vmatprep.subr.bf16.mxu1 %v3236_v11  ;;  %v164_v45 = vld [vmem:[#allocation10 + $0x1b0] sm:$0xff]  ;;  %v171_v49 = vld [vmem:[#allocation10 + $0x1e8] sm:$0xff]  ;;  %v173_v55 = vld [vmem:[#allocation10 + $0x1f8] sm:$0xff] }
  0x87   :  { %2045 = vmatmul.mubr.msk.f32.gmra.mrb[8].mxu1 %vm204_vm0, %v178_v14  ;;  %2153 = vmatpush1.bf16.msra.mxu0 %v3240_v15  ;;  %v180_v51 = vld [vmem:[#allocation5 + $0x30] sm:$0xff]  ;;  %v3276_v56 = vpack.c.bf16 %v164_v45, %v160_v44  ;;  %v166_v57 = vld [vmem:[#allocation10 + $0x1c0] sm:$0xff]  ;;  %v3280_v60 = vpack.c.bf16 %v171_v49, %v167_v48  ;;  %v3284_v1 = vpack.c.bf16 %v173_v55, %v169_v53  ;;  %v181_v3 = vld [vmem:[#allocation5 + $0x38] sm:$0xff] }
  0x88   :  { %2185 = vmatpush1.bf16.msra.mxu1 %v3244_v19  ;;  %323 = vmatprep.mubr.f32.mxu0 %v3050_v0  ;;  %v170_v59 = vld [vmem:[#allocation10 + $0x1e0] sm:$0xff]  ;;  %v168_v62 = vld [vmem:[#allocation10 + $0x1d0] sm:$0xff] }
  0x89   :  { %436 = vmatprep.mubr.f32.mxu1 %v3050_v0  ;;  %2155 = vmatprep.subr.bf16.mxu0 %v3248_v24  ;;  %v172_v63 = vld [vmem:[#allocation10 + $0x1f0] sm:$0xff]  ;;  %v3288_v4 = vpack.c.bf16 %v170_v59, %v166_v57  ;;  %v182_v12 = vld [vmem:[#allocation11] sm:$0xf] }
  0x8a   :  { %2038 = vmatmul.mubr.msk.f32.gmra.mrb[10].mxu0 %vm204_vm0, %v179_v32  ;;  %2187 = vmatprep.subr.bf16.mxu1 %v3252_v28  ;;  %v3292_v6 = vpack.c.bf16 %v172_v63, %v168_v62  ;;  %v3341_v14 = vrot.slane %v182_v12, %v186_v10  ;;  %v3343_v16 = vrot.slane %v182_v12, %v190_v13 }
  0x8b   :  { %2046 = vmatmul.mubr.msk.f32.gmra.mrb[10].mxu1 %vm204_vm0, %v179_v32  ;;  %2157 = vmatpush1.bf16.msra.mxu0 %v3256_v33  ;;  %v3347_v37 = vrot.slane %v182_v12, %v198_v20  ;;  %v3350_v44 = vrot.slane %v182_v12, %v194_v40 }
  0x8c   :  { %2189 = vmatpush1.bf16.msra.mxu1 %v3260_v39  ;;  %329 = vmatprep.mubr.f32.mxu0 %v3050_v0 }
  0x8d   :  { %442 = vmatprep.mubr.f32.mxu1 %v3050_v0  ;;  %2159 = vmatprep.subr.bf16.mxu0 %v3264_v43 }
  0x8e   :  { %2039 = vmatmul.mubr.msk.f32.gmra.mrb[12].mxu0 %vm204_vm0, %v180_v51  ;;  %2191 = vmatprep.subr.bf16.mxu1 %v3268_v46 }
  0x8f   :  { %2047 = vmatmul.mubr.msk.f32.gmra.mrb[12].mxu1 %vm204_vm0, %v180_v51  ;;  %2161 = vmatpush1.bf16.msra.mxu0 %v3272_v52 }
  0x90   :  { %2193 = vmatpush1.bf16.msra.mxu1 %v3276_v56  ;;  %335 = vmatprep.mubr.f32.mxu0 %v3050_v0 }
  0x91   :  { %448 = vmatprep.mubr.f32.mxu1 %v3050_v0  ;;  %2163 = vmatprep.subr.bf16.mxu0 %v3280_v60 }
  0x92   :  { %2040 = vmatmul.mubr.msk.f32.gmra.mrb[14].mxu0 %vm204_vm0, %v181_v3  ;;  %2195 = vmatprep.subr.bf16.mxu1 %v3284_v1 }
  0x93   :  { %2048 = vmatmul.mubr.msk.f32.gmra.mrb[14].mxu1 %vm204_vm0, %v181_v3  ;;  %2165 = vmatpush1.bf16.msra.mxu0 %v3288_v4 }
  0x94   :  { %2197 = vmatpush1.bf16.msra.mxu1 %v3292_v6  ;;  %558 = vmatprep.mubr.f32.mxu0 %v3050_v0 }
  0x95   :  { %629 = vmatprep.mubr.f32.mxu1 %v3050_v0  ;;  %2199 = vmatprep.subr.bf16.mxu0 %v3175_v17 }
  0x96   :  { %559 = vmatmul.mubr.f32.vlgmr.msra.gmra.mrb[0].mxu0 %v3050_v0  ;;  %2231 = vmatprep.subr.bf16.mxu1 %v3177_v21 }
  0x97   :  { %630 = vmatmul.mubr.f32.vlgmr.msra.gmra.mrb[0].mxu1 %v3050_v0  ;;  %2201 = vmatpush1.bf16.msra.mxu0 %v3179_v22 }
  0x98   :  { %2233 = vmatpush1.bf16.msra.mxu1 %v3182_v25  ;;  %2203 = vmatprep.subr.bf16.mxu0 %v3186_v29 }
  0x99   :  { %2235 = vmatprep.subr.bf16.mxu1 %v3190_v34  ;;  %737 = vmatprep.mubr.f32.mxu0 %v3050_v0 }
  0x9a   :  { %808 = vmatprep.mubr.f32.mxu1 %v3050_v0 }
  0x9b   :  { %2205 = vmatpush1.bf16.msra.mxu0 %v3192_v35 }
  0x9c   :  { %2237 = vmatpush1.bf16.msra.mxu1 %v3196_v38  ;;  %2207 = vmatprep.subr.bf16.mxu0 %v3200_v42 }
  0x9d   :  { %2239 = vmatprep.subr.bf16.mxu1 %v3204_v47 }
  0x9f   :  { %2209 = vmatpush1.bf16.msra.mxu0 %v3208_v50 }
  0xa0   :  { %2241 = vmatpush1.bf16.msra.mxu1 %v3212_v54  ;;  %2211 = vmatprep.subr.bf16.mxu0 %v3216_v58 }
  0xa1   :  { %2243 = vmatprep.subr.bf16.mxu1 %v3220_v61 }
  0xa3   :  { %2213 = vmatpush1.bf16.msra.mxu0 %v3224_v2 }
  0xa4   :  { %2245 = vmatpush1.bf16.msra.mxu1 %v3228_v5  ;;  %2215 = vmatprep.subr.bf16.mxu0 %v3232_v8 }
  0xa5   :  { %2247 = vmatprep.subr.bf16.mxu1 %v3236_v11 }
  0xa7   :  { %2217 = vmatpush1.bf16.msra.mxu0 %v3240_v15 }
  0xa8   :  { %2249 = vmatpush1.bf16.msra.mxu1 %v3244_v19  ;;  %2219 = vmatprep.subr.bf16.mxu0 %v3248_v24 }
  0xa9   :  { %2251 = vmatprep.subr.bf16.mxu1 %v3252_v28 }
  0xab   :  { %2221 = vmatpush1.bf16.msra.mxu0 %v3256_v33 }
  0xac   :  { %2253 = vmatpush1.bf16.msra.mxu1 %v3260_v39  ;;  %2223 = vmatprep.subr.bf16.mxu0 %v3264_v43 }
  0xad   :  { %2255 = vmatprep.subr.bf16.mxu1 %v3268_v46 }
  0xaf   :  { %2225 = vmatpush1.bf16.msra.mxu0 %v3272_v52 }
  0xb0   :  { %2257 = vmatpush1.bf16.msra.mxu1 %v3276_v56  ;;  %2227 = vmatprep.subr.bf16.mxu0 %v3280_v60 }
  0xb1   :  { %2259 = vmatprep.subr.bf16.mxu1 %v3284_v1 }
  0xb3   :  { %2229 = vmatpush1.bf16.msra.mxu0 %v3288_v4 }
  0xb4   :  { %2261 = vmatpush1.bf16.msra.mxu1 %v3292_v6  ;;  %2263 = vmatprep.subr.bf16.mxu0 %v3175_v17 }
  0xb5   :  { %2295 = vmatprep.subr.bf16.mxu1 %v3177_v21 }
 0x169   :  { %v560_v18 = vpop.f32.mrb[0].mxu0 }
 0x16a   :  { %v2670_v23 = vadd.f32 %v560_v18, %v3341_v14  ;;  %v631_v26 = vpop.f32.mrb[0].mxu1  ;;  %v562_v27 = vpop.f32.mrb[1].mxu0 }
 0x16b   :  { %v2671_v30 = vadd.f32 %v562_v27, %v3343_v16  ;;  %v633_v31 = vpop.f32.mrb[1].mxu1  ;;  %v2686_v48 = vadd.f32 %v631_v26, %v3350_v44 }
 0x16c   :  { %v2049_v32 = vmul.f32 -1.442695, %v2670_v23  ;;  %v2687_v41 = vadd.f32 %v633_v31, %v3347_v37 }
 0x16d   :  { %v2050_v36 = vmul.f32 -1.442695, %v2671_v30 }
 0x16e   :  { %2748 = vpow2.f32 %v2049_v32  ;;  %v2051_v45 = vmul.f32 -1.442695, %v2687_v41 }
 0x16f   :  { %2750 = vpow2.f32 %v2050_v36 }
 0x170   :  { %2752 = vpow2.f32 %v2051_v45 }
 0x171   :  { %2754 = vtanh.f32 %v2686_v48 }
 0x178   :  { %v2749_v49 = vpop.eup %2748 }
 0x179   :  { %v2751_v51 = vpop.eup %2750  ;;  %v643_v53 = vadd.f32 1.0, %v2749_v49 }
 0x17a   :  { %v649_v55 = vadd.f32 1.0, %v2751_v51  ;;  %v2753_v57 = vpop.eup %2752 }
 0x17b   :  { %2756 = vrcp.f32 %v643_v53  ;;  %v2755_v59 = vpop.eup %2754  ;;  %v656_v7 = vadd.f32 1.0, %v2753_v57 }
 0x17c   :  { %2758 = vrcp.f32 %v649_v55 }
 0x17d   :  { %2760 = vrcp.f32 %v656_v7 }
 0x185   :  { %v2757_v62 = vpop.eup %2756 }
 0x186   :  { %v2759_v63 = vpop.eup %2758  ;;  %v661_v3 = vmul.f32 %v2757_v62, %v2755_v59 }
 0x187   :  { %v660_v9 = vmul.f32 0.0, %v2759_v63  ;;  %v2761_v12 = vpop.eup %2760 }
 0x189   :  { %v3353_v10 = vadd.f32 %v661_v3, %v660_v9 }
 0x18b   :  { %2762 = vtanh.f32 %v3353_v10 }
 0x195   :  { %v2763_v13 = vpop.eup %2762 }
 0x196   :  { %v665_v18 = vmul.f32 %v2763_v13, %v2761_v12 }
 0x198   :  { %738 = vmatmul.mubr.f32.vlgmr.msra.gmra.mrb[2].mxu0 %v665_v18  ;;  %809 = vmatmul.mubr.f32.vlgmr.msra.gmra.mrb[2].mxu1 %v665_v18 }
 0x199   :  { %2265 = vmatpush1.bf16.msra.mxu0 %v3179_v22  ;;  %2297 = vmatpush1.bf16.msra.mxu1 %v3182_v25 }
 0x19a   :  { %2267 = vmatprep.subr.bf16.mxu0 %v3186_v29  ;;  %2299 = vmatprep.subr.bf16.mxu1 %v3190_v34 }
 0x19b   :  { %916 = vmatprep.mubr.f32.mxu0 %v3050_v0  ;;  %987 = vmatprep.mubr.f32.mxu1 %v3050_v0 }
 0x19d   :  { %2269 = vmatpush1.bf16.msra.mxu0 %v3192_v35  ;;  %2301 = vmatpush1.bf16.msra.mxu1 %v3196_v38 }
 0x19e   :  { %2271 = vmatprep.subr.bf16.mxu0 %v3200_v42  ;;  %2303 = vmatprep.subr.bf16.mxu1 %v3204_v47 }
 0x1a1   :  { %2273 = vmatpush1.bf16.msra.mxu0 %v3208_v50  ;;  %2305 = vmatpush1.bf16.msra.mxu1 %v3212_v54 }
 0x1a2   :  { %2275 = vmatprep.subr.bf16.mxu0 %v3216_v58  ;;  %2307 = vmatprep.subr.bf16.mxu1 %v3220_v61 }
 0x1a5   :  { %2277 = vmatpush1.bf16.msra.mxu0 %v3224_v2  ;;  %2309 = vmatpush1.bf16.msra.mxu1 %v3228_v5 }
 0x1a6   :  { %2279 = vmatprep.subr.bf16.mxu0 %v3232_v8  ;;  %2311 = vmatprep.subr.bf16.mxu1 %v3236_v11 }
 0x1a9   :  { %2281 = vmatpush1.bf16.msra.mxu0 %v3240_v15  ;;  %2313 = vmatpush1.bf16.msra.mxu1 %v3244_v19 }
 0x1aa   :  { %2283 = vmatprep.subr.bf16.mxu0 %v3248_v24  ;;  %2315 = vmatprep.subr.bf16.mxu1 %v3252_v28 }
 0x1ad   :  { %2285 = vmatpush1.bf16.msra.mxu0 %v3256_v33  ;;  %2317 = vmatpush1.bf16.msra.mxu1 %v3260_v39 }
 0x1ae   :  { %2287 = vmatprep.subr.bf16.mxu0 %v3264_v43  ;;  %2319 = vmatprep.subr.bf16.mxu1 %v3268_v46 }
 0x1b1   :  { %2289 = vmatpush1.bf16.msra.mxu0 %v3272_v52  ;;  %2321 = vmatpush1.bf16.msra.mxu1 %v3276_v56 }
 0x1b2   :  { %2291 = vmatprep.subr.bf16.mxu0 %v3280_v60  ;;  %2323 = vmatprep.subr.bf16.mxu1 %v3284_v1 }
 0x1b5   :  { %2293 = vmatpush1.bf16.msra.mxu0 %v3288_v4  ;;  %2325 = vmatpush1.bf16.msra.mxu1 %v3292_v6 }
 0x1b6   :  { %2327 = vmatprep.subr.bf16.mxu0 %v3175_v17  ;;  %2359 = vmatprep.subr.bf16.mxu1 %v3177_v21 }
 0x26b   :  { %v739_v20 = vpop.f32.mrb[2].mxu0  ;;  %v810_v23 = vpop.f32.mrb[2].mxu1 }
 0x26c   :  { %v2672_v26 = vadd.f32 %v739_v20, %v3341_v14  ;;  %v741_v27 = vpop.f32.mrb[3].mxu0  ;;  %v812_v30 = vpop.f32.mrb[3].mxu1  ;;  %v2688_v45 = vadd.f32 %v810_v23, %v3350_v44 }
 0x26d   :  { %v2673_v31 = vadd.f32 %v741_v27, %v3343_v16  ;;  %v2689_v40 = vadd.f32 %v812_v30, %v3347_v37 }
 0x26e   :  { %v2052_v32 = vmul.f32 -1.442695, %v2672_v26 }
 0x26f   :  { %v2053_v36 = vmul.f32 -1.442695, %v2673_v31  ;;  %v2054_v41 = vmul.f32 -1.442695, %v2689_v40 }
 0x270   :  { %2764 = vpow2.f32 %v2052_v32 }
 0x271   :  { %2766 = vpow2.f32 %v2053_v36 }
 0x272   :  { %2768 = vpow2.f32 %v2054_v41 }
 0x273   :  { %2770 = vtanh.f32 %v2688_v45 }
 0x27a   :  { %v2765_v48 = vpop.eup %2764 }
 0x27b   :  { %v2767_v49 = vpop.eup %2766  ;;  %v822_v51 = vadd.f32 1.0, %v2765_v48 }
 0x27c   :  { %v828_v53 = vadd.f32 1.0, %v2767_v49  ;;  %v2769_v55 = vpop.eup %2768 }
 0x27d   :  { %2772 = vrcp.f32 %v822_v51  ;;  %v2771_v57 = vpop.eup %2770  ;;  %v835_v3 = vadd.f32 1.0, %v2769_v55 }
 0x27e   :  { %2774 = vrcp.f32 %v828_v53 }
 0x27f   :  { %2776 = vrcp.f32 %v835_v3 }
 0x287   :  { %v2773_v59 = vpop.eup %2772 }
 0x288   :  { %v2775_v62 = vpop.eup %2774  ;;  %v840_v63 = vmul.f32 %v2773_v59, %v2771_v57 }
 0x289   :  { %v839_v7 = vmul.f32 %v2775_v62, %v3353_v10  ;;  %v2777_v12 = vpop.eup %2776 }
 0x28b   :  { %v3395_v9 = vadd.f32 %v840_v63, %v839_v7 }
 0x28d   :  { %2778 = vtanh.f32 %v3395_v9 }
 0x297   :  { %v2779_v13 = vpop.eup %2778 }
 0x298   :  { %v844_v18 = vmul.f32 %v2779_v13, %v2777_v12 }
 0x29a   :  { %917 = vmatmul.mubr.f32.vlgmr.msra.gmra.mrb[4].mxu0 %v844_v18  ;;  %988 = vmatmul.mubr.f32.vlgmr.msra.gmra.mrb[4].mxu1 %v844_v18 }
 0x29b   :  { %2329 = vmatpush1.bf16.msra.mxu0 %v3179_v22  ;;  %2361 = vmatpush1.bf16.msra.mxu1 %v3182_v25 }
 0x29c   :  { %2331 = vmatprep.subr.bf16.mxu0 %v3186_v29  ;;  %2363 = vmatprep.subr.bf16.mxu1 %v3190_v34 }
 0x29d   :  { %1095 = vmatprep.mubr.f32.mxu0 %v3050_v0  ;;  %1166 = vmatprep.mubr.f32.mxu1 %v3050_v0 }
 0x29f   :  { %2333 = vmatpush1.bf16.msra.mxu0 %v3192_v35  ;;  %2365 = vmatpush1.bf16.msra.mxu1 %v3196_v38 }
 0x2a0   :  { %2335 = vmatprep.subr.bf16.mxu0 %v3200_v42  ;;  %2367 = vmatprep.subr.bf16.mxu1 %v3204_v47 }
 0x2a3   :  { %2337 = vmatpush1.bf16.msra.mxu0 %v3208_v50  ;;  %2369 = vmatpush1.bf16.msra.mxu1 %v3212_v54 }
 0x2a4   :  { %2339 = vmatprep.subr.bf16.mxu0 %v3216_v58  ;;  %2371 = vmatprep.subr.bf16.mxu1 %v3220_v61 }
 0x2a7   :  { %2341 = vmatpush1.bf16.msra.mxu0 %v3224_v2  ;;  %2373 = vmatpush1.bf16.msra.mxu1 %v3228_v5 }
 0x2a8   :  { %2343 = vmatprep.subr.bf16.mxu0 %v3232_v8  ;;  %2375 = vmatprep.subr.bf16.mxu1 %v3236_v11 }
 0x2ab   :  { %2345 = vmatpush1.bf16.msra.mxu0 %v3240_v15  ;;  %2377 = vmatpush1.bf16.msra.mxu1 %v3244_v19 }
 0x2ac   :  { %2347 = vmatprep.subr.bf16.mxu0 %v3248_v24  ;;  %2379 = vmatprep.subr.bf16.mxu1 %v3252_v28 }
 0x2af   :  { %2349 = vmatpush1.bf16.msra.mxu0 %v3256_v33  ;;  %2381 = vmatpush1.bf16.msra.mxu1 %v3260_v39 }
 0x2b0   :  { %2351 = vmatprep.subr.bf16.mxu0 %v3264_v43  ;;  %2383 = vmatprep.subr.bf16.mxu1 %v3268_v46 }
 0x2b3   :  { %2353 = vmatpush1.bf16.msra.mxu0 %v3272_v52  ;;  %2385 = vmatpush1.bf16.msra.mxu1 %v3276_v56 }
 0x2b4   :  { %2355 = vmatprep.subr.bf16.mxu0 %v3280_v60  ;;  %2387 = vmatprep.subr.bf16.mxu1 %v3284_v1 }
 0x2b7   :  { %2357 = vmatpush1.bf16.msra.mxu0 %v3288_v4  ;;  %2389 = vmatpush1.bf16.msra.mxu1 %v3292_v6 }
 0x2b8   :  { %2391 = vmatprep.subr.bf16.mxu0 %v3175_v17  ;;  %2423 = vmatprep.subr.bf16.mxu1 %v3177_v21 }
 0x36d   :  { %v918_v10 = vpop.f32.mrb[4].mxu0  ;;  %v989_v20 = vpop.f32.mrb[4].mxu1 }
 0x36e   :  { %v2674_v23 = vadd.f32 %v918_v10, %v3341_v14  ;;  %v920_v26 = vpop.f32.mrb[5].mxu0  ;;  %v991_v27 = vpop.f32.mrb[5].mxu1  ;;  %v2690_v41 = vadd.f32 %v989_v20, %v3350_v44 }
 0x36f   :  { %v2675_v30 = vadd.f32 %v920_v26, %v3343_v16  ;;  %v2691_v36 = vadd.f32 %v991_v27, %v3347_v37 }
 0x370   :  { %v2055_v31 = vmul.f32 -1.442695, %v2674_v23 }
 0x371   :  { %v2056_v32 = vmul.f32 -1.442695, %v2675_v30  ;;  %v2057_v40 = vmul.f32 -1.442695, %v2691_v36 }
 0x372   :  { %2780 = vpow2.f32 %v2055_v31 }
 0x373   :  { %2782 = vpow2.f32 %v2056_v32 }
 0x374   :  { %2784 = vpow2.f32 %v2057_v40 }
 0x375   :  { %2786 = vtanh.f32 %v2690_v41 }
 0x37c   :  { %v2781_v45 = vpop.eup %2780 }
 0x37d   :  { %v2783_v48 = vpop.eup %2782  ;;  %v1001_v49 = vadd.f32 1.0, %v2781_v45 }
 0x37e   :  { %v1007_v51 = vadd.f32 1.0, %v2783_v48  ;;  %v2785_v53 = vpop.eup %2784 }
 0x37f   :  { %2788 = vrcp.f32 %v1001_v49  ;;  %v2787_v55 = vpop.eup %2786  ;;  %v1014_v63 = vadd.f32 1.0, %v2785_v53 }
 0x380   :  { %2790 = vrcp.f32 %v1007_v51 }
 0x381   :  { %2792 = vrcp.f32 %v1014_v63 }
 0x389   :  { %v2789_v57 = vpop.eup %2788 }
 0x38a   :  { %v2791_v59 = vpop.eup %2790  ;;  %v1019_v62 = vmul.f32 %v2789_v57, %v2787_v55 }
 0x38b   :  { %v1018_v3 = vmul.f32 %v2791_v59, %v3395_v9  ;;  %v2793_v12 = vpop.eup %2792 }
 0x38d   :  { %v3437_v7 = vadd.f32 %v1019_v62, %v1018_v3 }
 0x38f   :  { %2794 = vtanh.f32 %v3437_v7 }
 0x399   :  { %v2795_v13 = vpop.eup %2794 }
 0x39a   :  { %v1023_v18 = vmul.f32 %v2795_v13, %v2793_v12 }
 0x39c   :  { %1096 = vmatmul.mubr.f32.vlgmr.msra.gmra.mrb[6].mxu0 %v1023_v18  ;;  %1167 = vmatmul.mubr.f32.vlgmr.msra.gmra.mrb[6].mxu1 %v1023_v18 }
 0x39d   :  { %2393 = vmatpush1.bf16.msra.mxu0 %v3179_v22  ;;  %2425 = vmatpush1.bf16.msra.mxu1 %v3182_v25 }
 0x39e   :  { %2395 = vmatprep.subr.bf16.mxu0 %v3186_v29  ;;  %2427 = vmatprep.subr.bf16.mxu1 %v3190_v34 }
 0x39f   :  { %1274 = vmatprep.mubr.f32.mxu0 %v3050_v0  ;;  %1345 = vmatprep.mubr.f32.mxu1 %v3050_v0 }
 0x3a1   :  { %2397 = vmatpush1.bf16.msra.mxu0 %v3192_v35  ;;  %2429 = vmatpush1.bf16.msra.mxu1 %v3196_v38 }
 0x3a2   :  { %2399 = vmatprep.subr.bf16.mxu0 %v3200_v42  ;;  %2431 = vmatprep.subr.bf16.mxu1 %v3204_v47 }
 0x3a5   :  { %2401 = vmatpush1.bf16.msra.mxu0 %v3208_v50  ;;  %2433 = vmatpush1.bf16.msra.mxu1 %v3212_v54 }
 0x3a6   :  { %2403 = vmatprep.subr.bf16.mxu0 %v3216_v58  ;;  %2435 = vmatprep.subr.bf16.mxu1 %v3220_v61 }
 0x3a9   :  { %2405 = vmatpush1.bf16.msra.mxu0 %v3224_v2  ;;  %2437 = vmatpush1.bf16.msra.mxu1 %v3228_v5 }
 0x3aa   :  { %2407 = vmatprep.subr.bf16.mxu0 %v3232_v8  ;;  %2439 = vmatprep.subr.bf16.mxu1 %v3236_v11 }
 0x3ad   :  { %2409 = vmatpush1.bf16.msra.mxu0 %v3240_v15  ;;  %2441 = vmatpush1.bf16.msra.mxu1 %v3244_v19 }
 0x3ae   :  { %2411 = vmatprep.subr.bf16.mxu0 %v3248_v24  ;;  %2443 = vmatprep.subr.bf16.mxu1 %v3252_v28 }
 0x3b1   :  { %2413 = vmatpush1.bf16.msra.mxu0 %v3256_v33  ;;  %2445 = vmatpush1.bf16.msra.mxu1 %v3260_v39 }
 0x3b2   :  { %2415 = vmatprep.subr.bf16.mxu0 %v3264_v43  ;;  %2447 = vmatprep.subr.bf16.mxu1 %v3268_v46 }
 0x3b5   :  { %2417 = vmatpush1.bf16.msra.mxu0 %v3272_v52  ;;  %2449 = vmatpush1.bf16.msra.mxu1 %v3276_v56 }
 0x3b6   :  { %2419 = vmatprep.subr.bf16.mxu0 %v3280_v60  ;;  %2451 = vmatprep.subr.bf16.mxu1 %v3284_v1 }
 0x3b9   :  { %2421 = vmatpush1.bf16.msra.mxu0 %v3288_v4  ;;  %2453 = vmatpush1.bf16.msra.mxu1 %v3292_v6 }
 0x3ba   :  { %2455 = vmatprep.subr.bf16.mxu0 %v3175_v17  ;;  %2487 = vmatprep.subr.bf16.mxu1 %v3177_v21 }
 0x46f   :  { %v1097_v9 = vpop.f32.mrb[6].mxu0  ;;  %v1168_v10 = vpop.f32.mrb[6].mxu1 }
 0x470   :  { %v2676_v20 = vadd.f32 %v1097_v9, %v3341_v14  ;;  %v1099_v23 = vpop.f32.mrb[7].mxu0  ;;  %v1170_v26 = vpop.f32.mrb[7].mxu1  ;;  %v2692_v40 = vadd.f32 %v1168_v10, %v3350_v44 }
 0x471   :  { %v2677_v27 = vadd.f32 %v1099_v23, %v3343_v16  ;;  %v2693_v32 = vadd.f32 %v1170_v26, %v3347_v37 }
 0x472   :  { %v2058_v30 = vmul.f32 -1.442695, %v2676_v20 }
 0x473   :  { %v2059_v31 = vmul.f32 -1.442695, %v2677_v27  ;;  %v2060_v36 = vmul.f32 -1.442695, %v2693_v32 }
 0x474   :  { %2796 = vpow2.f32 %v2058_v30 }
 0x475   :  { %2798 = vpow2.f32 %v2059_v31 }
 0x476   :  { %2800 = vpow2.f32 %v2060_v36 }
 0x477   :  { %2802 = vtanh.f32 %v2692_v40 }
 0x47e   :  { %v2797_v41 = vpop.eup %2796 }
 0x47f   :  { %v2799_v45 = vpop.eup %2798  ;;  %v1180_v48 = vadd.f32 1.0, %v2797_v41 }
 0x480   :  { %v1186_v49 = vadd.f32 1.0, %v2799_v45  ;;  %v2801_v51 = vpop.eup %2800 }
 0x481   :  { %2804 = vrcp.f32 %v1180_v48  ;;  %v2803_v53 = vpop.eup %2802  ;;  %v1193_v62 = vadd.f32 1.0, %v2801_v51 }
 0x482   :  { %2806 = vrcp.f32 %v1186_v49 }
 0x483   :  { %2808 = vrcp.f32 %v1193_v62 }
 0x48b   :  { %v2805_v55 = vpop.eup %2804 }
 0x48c   :  { %v2807_v57 = vpop.eup %2806  ;;  %v1198_v59 = vmul.f32 %v2805_v55, %v2803_v53 }
 0x48d   :  { %v1197_v63 = vmul.f32 %v2807_v57, %v3437_v7  ;;  %v2809_v12 = vpop.eup %2808 }
 0x48f   :  { %v3479_v3 = vadd.f32 %v1198_v59, %v1197_v63 }
 0x491   :  { %2810 = vtanh.f32 %v3479_v3 }
 0x49b   :  { %v2811_v13 = vpop.eup %2810 }
 0x49c   :  { %v1202_v18 = vmul.f32 %v2811_v13, %v2809_v12 }
 0x49e   :  { %1275 = vmatmul.mubr.f32.vlgmr.msra.gmra.mrb[8].mxu0 %v1202_v18  ;;  %1346 = vmatmul.mubr.f32.vlgmr.msra.gmra.mrb[8].mxu1 %v1202_v18 }
 0x49f   :  { %2457 = vmatpush1.bf16.msra.mxu0 %v3179_v22  ;;  %2489 = vmatpush1.bf16.msra.mxu1 %v3182_v25 }
 0x4a0   :  { %2459 = vmatprep.subr.bf16.mxu0 %v3186_v29  ;;  %2491 = vmatprep.subr.bf16.mxu1 %v3190_v34 }
 0x4a1   :  { %1453 = vmatprep.mubr.f32.mxu0 %v3050_v0  ;;  %1524 = vmatprep.mubr.f32.mxu1 %v3050_v0 }
 0x4a3   :  { %2461 = vmatpush1.bf16.msra.mxu0 %v3192_v35  ;;  %2493 = vmatpush1.bf16.msra.mxu1 %v3196_v38 }
 0x4a4   :  { %2463 = vmatprep.subr.bf16.mxu0 %v3200_v42  ;;  %2495 = vmatprep.subr.bf16.mxu1 %v3204_v47 }
 0x4a7   :  { %2465 = vmatpush1.bf16.msra.mxu0 %v3208_v50  ;;  %2497 = vmatpush1.bf16.msra.mxu1 %v3212_v54 }
 0x4a8   :  { %2467 = vmatprep.subr.bf16.mxu0 %v3216_v58  ;;  %2499 = vmatprep.subr.bf16.mxu1 %v3220_v61 }
 0x4ab   :  { %2469 = vmatpush1.bf16.msra.mxu0 %v3224_v2  ;;  %2501 = vmatpush1.bf16.msra.mxu1 %v3228_v5 }
 0x4ac   :  { %2471 = vmatprep.subr.bf16.mxu0 %v3232_v8  ;;  %2503 = vmatprep.subr.bf16.mxu1 %v3236_v11 }
 0x4af   :  { %2473 = vmatpush1.bf16.msra.mxu0 %v3240_v15  ;;  %2505 = vmatpush1.bf16.msra.mxu1 %v3244_v19 }
 0x4b0   :  { %2475 = vmatprep.subr.bf16.mxu0 %v3248_v24  ;;  %2507 = vmatprep.subr.bf16.mxu1 %v3252_v28 }
 0x4b3   :  { %2477 = vmatpush1.bf16.msra.mxu0 %v3256_v33  ;;  %2509 = vmatpush1.bf16.msra.mxu1 %v3260_v39 }
 0x4b4   :  { %2479 = vmatprep.subr.bf16.mxu0 %v3264_v43  ;;  %2511 = vmatprep.subr.bf16.mxu1 %v3268_v46 }
 0x4b7   :  { %2481 = vmatpush1.bf16.msra.mxu0 %v3272_v52  ;;  %2513 = vmatpush1.bf16.msra.mxu1 %v3276_v56 }
 0x4b8   :  { %2483 = vmatprep.subr.bf16.mxu0 %v3280_v60  ;;  %2515 = vmatprep.subr.bf16.mxu1 %v3284_v1 }
 0x4bb   :  { %2485 = vmatpush1.bf16.msra.mxu0 %v3288_v4  ;;  %2517 = vmatpush1.bf16.msra.mxu1 %v3292_v6 }
 0x4bc   :  { %2519 = vmatprep.subr.bf16.mxu0 %v3175_v17  ;;  %2551 = vmatprep.subr.bf16.mxu1 %v3177_v21 }
 0x571   :  { %v1276_v7 = vpop.f32.mrb[8].mxu0  ;;  %v1347_v9 = vpop.f32.mrb[8].mxu1 }
 0x572   :  { %v2678_v10 = vadd.f32 %v1276_v7, %v3341_v14  ;;  %v1278_v20 = vpop.f32.mrb[9].mxu0  ;;  %v1349_v23 = vpop.f32.mrb[9].mxu1  ;;  %v2694_v36 = vadd.f32 %v1347_v9, %v3350_v44 }
 0x573   :  { %v2679_v26 = vadd.f32 %v1278_v20, %v3343_v16  ;;  %v2695_v31 = vadd.f32 %v1349_v23, %v3347_v37 }
 0x574   :  { %v2061_v27 = vmul.f32 -1.442695, %v2678_v10 }
 0x575   :  { %v2062_v30 = vmul.f32 -1.442695, %v2679_v26  ;;  %v2063_v32 = vmul.f32 -1.442695, %v2695_v31 }
 0x576   :  { %2812 = vpow2.f32 %v2061_v27 }
 0x577   :  { %2814 = vpow2.f32 %v2062_v30 }
 0x578   :  { %2816 = vpow2.f32 %v2063_v32 }
 0x579   :  { %2818 = vtanh.f32 %v2694_v36 }
 0x580   :  { %v2813_v40 = vpop.eup %2812 }
 0x581   :  { %v2815_v41 = vpop.eup %2814  ;;  %v1359_v45 = vadd.f32 1.0, %v2813_v40 }
 0x582   :  { %v1365_v48 = vadd.f32 1.0, %v2815_v41  ;;  %v2817_v49 = vpop.eup %2816 }
 0x583   :  { %2820 = vrcp.f32 %v1359_v45  ;;  %v2819_v51 = vpop.eup %2818  ;;  %v1372_v59 = vadd.f32 1.0, %v2817_v49 }
 0x584   :  { %2822 = vrcp.f32 %v1365_v48 }
 0x585   :  { %2824 = vrcp.f32 %v1372_v59 }
 0x58d   :  { %v2821_v53 = vpop.eup %2820 }
 0x58e   :  { %v2823_v55 = vpop.eup %2822  ;;  %v1377_v57 = vmul.f32 %v2821_v53, %v2819_v51 }
 0x58f   :  { %v1376_v62 = vmul.f32 %v2823_v55, %v3479_v3  ;;  %v2825_v12 = vpop.eup %2824 }
 0x591   :  { %v3521_v63 = vadd.f32 %v1377_v57, %v1376_v62 }
 0x593   :  { %2826 = vtanh.f32 %v3521_v63 }
 0x59d   :  { %v2827_v13 = vpop.eup %2826 }
 0x59e   :  { %v1381_v18 = vmul.f32 %v2827_v13, %v2825_v12  ;;  %v1923_v13 = vld [vmem:[#allocation13 + $0x18] sm:$0xff] }
 0x5a0   :  { %1454 = vmatmul.mubr.f32.vlgmr.msra.gmra.mrb[10].mxu0 %v1381_v18  ;;  %1525 = vmatmul.mubr.f32.vlgmr.msra.gmra.mrb[10].mxu1 %v1381_v18 }
 0x5a1   :  { %2521 = vmatpush1.bf16.msra.mxu0 %v3179_v22  ;;  %2553 = vmatpush1.bf16.msra.mxu1 %v3182_v25 }
 0x5a2   :  { %2523 = vmatprep.subr.bf16.mxu0 %v3186_v29  ;;  %2555 = vmatprep.subr.bf16.mxu1 %v3190_v34 }
 0x5a3   :  { %1632 = vmatprep.mubr.f32.mxu0 %v3050_v0  ;;  %1703 = vmatprep.mubr.f32.mxu1 %v3050_v0 }
 0x5a5   :  { %2525 = vmatpush1.bf16.msra.mxu0 %v3192_v35  ;;  %2557 = vmatpush1.bf16.msra.mxu1 %v3196_v38 }
 0x5a6   :  { %2527 = vmatprep.subr.bf16.mxu0 %v3200_v42  ;;  %2559 = vmatprep.subr.bf16.mxu1 %v3204_v47 }
 0x5a9   :  { %2529 = vmatpush1.bf16.msra.mxu0 %v3208_v50  ;;  %2561 = vmatpush1.bf16.msra.mxu1 %v3212_v54 }
 0x5aa   :  { %2531 = vmatprep.subr.bf16.mxu0 %v3216_v58  ;;  %2563 = vmatprep.subr.bf16.mxu1 %v3220_v61 }
 0x5ad   :  { %2533 = vmatpush1.bf16.msra.mxu0 %v3224_v2  ;;  %2565 = vmatpush1.bf16.msra.mxu1 %v3228_v5 }
 0x5ae   :  { %2535 = vmatprep.subr.bf16.mxu0 %v3232_v8  ;;  %2567 = vmatprep.subr.bf16.mxu1 %v3236_v11 }
 0x5b1   :  { %2537 = vmatpush1.bf16.msra.mxu0 %v3240_v15  ;;  %2569 = vmatpush1.bf16.msra.mxu1 %v3244_v19 }
 0x5b2   :  { %2539 = vmatprep.subr.bf16.mxu0 %v3248_v24  ;;  %2571 = vmatprep.subr.bf16.mxu1 %v3252_v28 }
 0x5b5   :  { %2541 = vmatpush1.bf16.msra.mxu0 %v3256_v33  ;;  %2573 = vmatpush1.bf16.msra.mxu1 %v3260_v39 }
 0x5b6   :  { %2543 = vmatprep.subr.bf16.mxu0 %v3264_v43  ;;  %2575 = vmatprep.subr.bf16.mxu1 %v3268_v46 }
 0x5b9   :  { %2545 = vmatpush1.bf16.msra.mxu0 %v3272_v52  ;;  %2577 = vmatpush1.bf16.msra.mxu1 %v3276_v56 }
 0x5ba   :  { %2547 = vmatprep.subr.bf16.mxu0 %v3280_v60  ;;  %2579 = vmatprep.subr.bf16.mxu1 %v3284_v1 }
 0x5bd   :  { %2549 = vmatpush1.bf16.msra.mxu0 %v3288_v4  ;;  %2581 = vmatpush1.bf16.msra.mxu1 %v3292_v6 }
 0x5be   :  { %2583 = vmatprep.subr.bf16.mxu0 %v3175_v17  ;;  %2615 = vmatprep.subr.bf16.mxu1 %v3177_v21 }
 0x673   :  { %v1455_v3 = vpop.f32.mrb[10].mxu0  ;;  %v1526_v7 = vpop.f32.mrb[10].mxu1 }
 0x674   :  { %v2680_v9 = vadd.f32 %v1455_v3, %v3341_v14  ;;  %v1457_v10 = vpop.f32.mrb[11].mxu0  ;;  %v1528_v20 = vpop.f32.mrb[11].mxu1  ;;  %v2696_v32 = vadd.f32 %v1526_v7, %v3350_v44  ;;  %v1924_v3 = vld [vmem:[#allocation13 + $0x20] sm:$0xff]  ;;  %v1925_v7 = vld [vmem:[#allocation13 + $0x28] sm:$0xff] }
 0x675   :  { %v2681_v23 = vadd.f32 %v1457_v10, %v3343_v16  ;;  %v2697_v30 = vadd.f32 %v1528_v20, %v3347_v37  ;;  %v1926_v10 = vld [vmem:[#allocation13 + $0x30] sm:$0xff]  ;;  %v1927_v20 = vld [vmem:[#allocation13 + $0x38] sm:$0xff] }
 0x676   :  { %v2064_v26 = vmul.f32 -1.442695, %v2680_v9  ;;  %v2653_v9 = vpack.c.bf16 %v1925_v7, %v1924_v3 }
 0x677   :  { %v2065_v27 = vmul.f32 -1.442695, %v2681_v23  ;;  %v2066_v31 = vmul.f32 -1.442695, %v2697_v30  ;;  %v2656_v23 = vpack.c.bf16 %v1927_v20, %v1926_v10 }
 0x678   :  { %2828 = vpow2.f32 %v2064_v26  ;;  %v1928_v26 = vld [vmem:[#allocation13 + $0x40] sm:$0xff] }
 0x679   :  { %2830 = vpow2.f32 %v2065_v27  ;;  %v1929_v27 = vld [vmem:[#allocation13 + $0x48] sm:$0xff] }
 0x67a   :  { %2832 = vpow2.f32 %v2066_v31  ;;  %v2659_v30 = vpack.c.bf16 %v1929_v27, %v1928_v26  ;;  %v1930_v31 = vld [vmem:[#allocation13 + $0x50] sm:$0xff] }
 0x67b   :  { %2834 = vtanh.f32 %v2696_v32  ;;  %v1931_v32 = vld [vmem:[#allocation13 + $0x58] sm:$0xff] }
 0x682   :  { %v2829_v17 = vpop.eup %2828 }
 0x683   :  { %v2831_v36 = vpop.eup %2830  ;;  %v1538_v21 = vadd.f32 1.0, %v2829_v17  ;;  %v1932_v17 = vld [vmem:[#allocation13 + $0x60] sm:$0xff] }
 0x684   :  { %v1544_v40 = vadd.f32 1.0, %v2831_v36  ;;  %v2833_v41 = vpop.eup %2832  ;;  %v2662_v36 = vpack.c.bf16 %v1931_v32, %v1930_v31 }
 0x685   :  { %2836 = vrcp.f32 %v1538_v21  ;;  %v2835_v45 = vpop.eup %2834  ;;  %v1551_v53 = vadd.f32 1.0, %v2833_v41  ;;  %v1933_v21 = vld [vmem:[#allocation13 + $0x68] sm:$0xff]  ;;  %v1934_v41 = vld [vmem:[#allocation13 + $0x70] sm:$0xff] }
 0x686   :  { %2838 = vrcp.f32 %v1544_v40  ;;  %v2665_v40 = vpack.c.bf16 %v1933_v21, %v1932_v17 }
 0x687   :  { %2840 = vrcp.f32 %v1551_v53 }
 0x68f   :  { %v2837_v48 = vpop.eup %2836 }
 0x690   :  { %v2839_v49 = vpop.eup %2838  ;;  %v1556_v51 = vmul.f32 %v2837_v48, %v2835_v45  ;;  %v1935_v45 = vld [vmem:[#allocation13 + $0x78] sm:$0xff] }
 0x691   :  { %v1555_v55 = vmul.f32 %v2839_v49, %v3521_v63  ;;  %v2841_v59 = vpop.eup %2840  ;;  %v1922_v63 = vld [vmem:[#allocation13 + $0x10] sm:$0xff]  ;;  %v2668_v48 = vpack.c.bf16 %v1935_v45, %v1934_v41 }
 0x692   :  { %v2650_v18 = vpack.c.bf16 %v1923_v13, %v1922_v63 }
 0x693   :  { %v3563_v57 = vadd.f32 %v1556_v51, %v1555_v55 }
 0x695   :  { %2842 = vtanh.f32 %v3563_v57 }
 0x69f   :  { %v2843_v62 = vpop.eup %2842 }
 0x6a0   :  { %v1560_v12 = vmul.f32 %v2843_v62, %v2841_v59 }
 0x6a2   :  { %1633 = vmatmul.mubr.f32.vlgmr.msra.gmra.mrb[12].mxu0 %v1560_v12  ;;  %1704 = vmatmul.mubr.f32.vlgmr.msra.gmra.mrb[12].mxu1 %v1560_v12 }
 0x6a3   :  { %2585 = vmatpush1.bf16.msra.mxu0 %v3179_v22  ;;  %2617 = vmatpush1.bf16.msra.mxu1 %v3182_v25 }
 0x6a4   :  { %2587 = vmatprep.subr.bf16.mxu0 %v3186_v29  ;;  %2619 = vmatprep.subr.bf16.mxu1 %v3190_v34 }
 0x6a5   :  { %1811 = vmatprep.mubr.f32.mxu0 %v3050_v0  ;;  %1882 = vmatprep.mubr.f32.mxu1 %v3050_v0 }
 0x6a7   :  { %2589 = vmatpush1.bf16.msra.mxu0 %v3192_v35  ;;  %2621 = vmatpush1.bf16.msra.mxu1 %v3196_v38 }
 0x6a8   :  { %2591 = vmatprep.subr.bf16.mxu0 %v3200_v42  ;;  %2623 = vmatprep.subr.bf16.mxu1 %v3204_v47 }
 0x6ab   :  { %2593 = vmatpush1.bf16.msra.mxu0 %v3208_v50  ;;  %2625 = vmatpush1.bf16.msra.mxu1 %v3212_v54 }
 0x6ac   :  { %2595 = vmatprep.subr.bf16.mxu0 %v3216_v58  ;;  %2627 = vmatprep.subr.bf16.mxu1 %v3220_v61 }
 0x6af   :  { %2597 = vmatpush1.bf16.msra.mxu0 %v3224_v2  ;;  %2629 = vmatpush1.bf16.msra.mxu1 %v3228_v5 }
 0x6b0   :  { %2599 = vmatprep.subr.bf16.mxu0 %v3232_v8  ;;  %2631 = vmatprep.subr.bf16.mxu1 %v3236_v11 }
 0x6b3   :  { %2601 = vmatpush1.bf16.msra.mxu0 %v3240_v15  ;;  %2633 = vmatpush1.bf16.msra.mxu1 %v3244_v19 }
 0x6b4   :  { %2603 = vmatprep.subr.bf16.mxu0 %v3248_v24  ;;  %2635 = vmatprep.subr.bf16.mxu1 %v3252_v28 }
 0x6b7   :  { %2605 = vmatpush1.bf16.msra.mxu0 %v3256_v33  ;;  %2637 = vmatpush1.bf16.msra.mxu1 %v3260_v39 }
 0x6b8   :  { %2607 = vmatprep.subr.bf16.mxu0 %v3264_v43  ;;  %2639 = vmatprep.subr.bf16.mxu1 %v3268_v46 }
 0x6bb   :  { %2609 = vmatpush1.bf16.msra.mxu0 %v3272_v52  ;;  %2641 = vmatpush1.bf16.msra.mxu1 %v3276_v56 }
 0x6bc   :  { %2611 = vmatprep.subr.bf16.mxu0 %v3280_v60  ;;  %2643 = vmatprep.subr.bf16.mxu1 %v3284_v1  ;;  %v1920_v60 = vld [vmem:[#allocation13] sm:$0xff]  ;;  %v1921_v1 = vld [vmem:[#allocation13 + $0x8] sm:$0xff] }
 0x6bf   :  { %2613 = vmatpush1.bf16.msra.mxu0 %v3288_v4  ;;  %2645 = vmatpush1.bf16.msra.mxu1 %v3292_v6  ;;  %v2647_v4 = vpack.c.bf16 %v1921_v1, %v1920_v60  ;;  %v3051_v6 = vmov 0.0|0.0  }
 0x6c0   :  { %2646 = vmatprep.subr.bf16.mxu0 %v3051_v6 }
 0x775   :  { %v1634_v22 = vpop.f32.mrb[12].mxu0  ;;  %v1705_v25 = vpop.f32.mrb[12].mxu1 }
 0x776   :  { %v2682_v29 = vadd.f32 %v1634_v22, %v3341_v14  ;;  %v1636_v34 = vpop.f32.mrb[13].mxu0  ;;  %v1707_v35 = vpop.f32.mrb[13].mxu1  ;;  %v2698_v58 = vadd.f32 %v1705_v25, %v3350_v44 }
 0x777   :  { %v2683_v38 = vadd.f32 %v1636_v34, %v3343_v16  ;;  %v2699_v50 = vadd.f32 %v1707_v35, %v3347_v37 }
 0x778   :  { %v2067_v42 = vmul.f32 -1.442695, %v2682_v29 }
 0x779   :  { %v2068_v47 = vmul.f32 -1.442695, %v2683_v38  ;;  %v2069_v54 = vmul.f32 -1.442695, %v2699_v50 }
 0x77a   :  { %2844 = vpow2.f32 %v2067_v42 }
 0x77b   :  { %2846 = vpow2.f32 %v2068_v47 }
 0x77c   :  { %2848 = vpow2.f32 %v2069_v54 }
 0x77d   :  { %2850 = vtanh.f32 %v2698_v58 }
 0x784   :  { %v2845_v61 = vpop.eup %2844 }
 0x785   :  { %v2847_v2 = vpop.eup %2846  ;;  %v1717_v5 = vadd.f32 1.0, %v2845_v61 }
 0x786   :  { %v1723_v8 = vadd.f32 1.0, %v2847_v2  ;;  %v2849_v11 = vpop.eup %2848 }
 0x787   :  { %2852 = vrcp.f32 %v1717_v5  ;;  %v2851_v15 = vpop.eup %2850  ;;  %v1730_v33 = vadd.f32 1.0, %v2849_v11  ;;  %v2073_v5 = vld [vmem:[#allocation14] ss:$0 sm:$0xff] }
 0x788   :  { %2854 = vrcp.f32 %v1723_v8 }
 0x789   :  { %2856 = vrcp.f32 %v1730_v33 }
 0x791   :  { %v2853_v19 = vpop.eup %2852 }
 0x792   :  { %v2855_v24 = vpop.eup %2854  ;;  %v1735_v28 = vmul.f32 %v2853_v19, %v2851_v15 }
 0x793   :  { %v1734_v39 = vmul.f32 %v2855_v24, %v3563_v57  ;;  %v2857_v46 = vpop.eup %2856 }
 0x795   :  { %v3603_v43 = vadd.f32 %v1735_v28, %v1734_v39 }
 0x797   :  { %2858 = vtanh.f32 %v3603_v43 }
 0x7a1   :  { %v2859_v52 = vpop.eup %2858 }
 0x7a2   :  { %v1739_v56 = vmul.f32 %v2859_v52, %v2857_v46 }
 0x7a4   :  { %1812 = vmatmul.mubr.f32.vlgmr.msra.gmra.mrb[14].mxu0 %v1739_v56  ;;  %1883 = vmatmul.mubr.f32.vlgmr.msra.gmra.mrb[14].mxu1 %v1739_v56 }
 0x7a5   :  { %2648 = vmatpush3.bf16.msra.mxu0 %v2647_v4  ;;  %2123 = vmatprep.mubr.msk.f32.mxu0 %vm3052_vm1, %v3050_v0 }
 0x7a6   :  { %2649 = vmatprep.subr.bf16.mxu0 %v3051_v6 }
 0x7a9   :  { %2651 = vmatpush3.bf16.msra.mxu0 %v2650_v18 }
 0x7aa   :  { %2652 = vmatprep.subr.bf16.mxu0 %v3051_v6 }
 0x7ad   :  { %2654 = vmatpush3.bf16.msra.mxu0 %v2653_v9 }
 0x7ae   :  { %2655 = vmatprep.subr.bf16.mxu0 %v3051_v6 }
 0x7b1   :  { %2657 = vmatpush3.bf16.msra.mxu0 %v2656_v23 }
 0x7b2   :  { %2658 = vmatprep.subr.bf16.mxu0 %v3051_v6 }
 0x7b5   :  { %2660 = vmatpush3.bf16.msra.mxu0 %v2659_v30 }
 0x7b6   :  { %2661 = vmatprep.subr.bf16.mxu0 %v3051_v6 }
 0x7b9   :  { %2663 = vmatpush3.bf16.msra.mxu0 %v2662_v36 }
 0x7ba   :  { %2664 = vmatprep.subr.bf16.mxu0 %v3051_v6 }
 0x7bd   :  { %2666 = vmatpush3.bf16.msra.mxu0 %v2665_v40 }
 0x7be   :  { %2667 = vmatprep.subr.bf16.mxu0 %v3051_v6 }
 0x7c1   :  { %2669 = vmatpush3.bf16.msra.mxu0 %v2668_v48 }
 0x877   :  { %v1813_v49 = vpop.f32.mrb[14].mxu0  ;;  %v1884_v51 = vpop.f32.mrb[14].mxu1 }
 0x878   :  { %v2684_v53 = vadd.f32 %v1813_v49, %v3341_v14  ;;  %v1815_v55 = vpop.f32.mrb[15].mxu0  ;;  %v1886_v57 = vpop.f32.mrb[15].mxu1  ;;  %v2700_v25 = vadd.f32 %v1884_v51, %v3350_v44 }
 0x879   :  { %v2685_v59 = vadd.f32 %v1815_v55, %v3343_v16  ;;  %v2701_v0 = vadd.f32 %v1886_v57, %v3347_v37 }
 0x87a   :  { %v2070_v62 = vmul.f32 -1.442695, %v2684_v53 }
 0x87b   :  { %v2071_v12 = vmul.f32 -1.442695, %v2685_v59  ;;  %v2072_v22 = vmul.f32 -1.442695, %v2701_v0 }
 0x87c   :  { %2860 = vpow2.f32 %v2070_v62 }
 0x87d   :  { %2862 = vpow2.f32 %v2071_v12 }
 0x87e   :  { %2864 = vpow2.f32 %v2072_v22 }
 0x87f   :  { %2866 = vtanh.f32 %v2700_v25 }
 0x886   :  { %v2861_v29 = vpop.eup %2860 }
 0x887   :  { %v2863_v34 = vpop.eup %2862  ;;  %v1896_v35 = vadd.f32 1.0, %v2861_v29 }
 0x888   :  { %v1902_v38 = vadd.f32 1.0, %v2863_v34  ;;  %v2865_v14 = vpop.eup %2864 }
 0x889   :  { %2868 = vrcp.f32 %v1896_v35  ;;  %v2867_v42 = vpop.eup %2866  ;;  %v1909_v54 = vadd.f32 1.0, %v2865_v14 }
 0x88a   :  { %2870 = vrcp.f32 %v1902_v38 }
 0x88b   :  { %2872 = vrcp.f32 %v1909_v54 }
 0x893   :  { %v2869_v16 = vpop.eup %2868 }
 0x894   :  { %v2871_v47 = vpop.eup %2870  ;;  %v1914_v50 = vmul.f32 %v2869_v16, %v2867_v42 }
 0x895   :  { %v1913_v58 = vmul.f32 %v2871_v47, %v3603_v43  ;;  %v2873_v44 = vpop.eup %2872 }
 0x897   :  { %v1915_v37 = vadd.f32 %v1914_v50, %v1913_v58 }
 0x899   :  { %2874 = vtanh.f32 %v1915_v37 }
 0x8a3   :  { %v2875_v61 = vpop.eup %2874 }
 0x8a4   :  { %v1918_v2 = vmul.f32 %v2875_v61, %v2873_v44 }
 0x8a6   :  { %2124 = vmatmul.mubr.f32.vlgmr.msra.gmra.mrb[16].mxu0 %v1918_v2 }
 0x979   :  { %v2010_v8 = vpop.f32.mrb[16].mxu0 }
 0x97a   :  { %v2011_v11 = vadd.f32 %v2073_v5, %v2010_v8  ;;  %v2125_v15 = vpop.f32.mrb[17].mxu0 }
 0x97c   :  { %2014 = vst [vmem:[#allocation16] sm:$0xff] %v2011_v11 }
 0x97d   :  { %3019 = shalt.err (!%p3016_p10)
}
 0x97e   :  { %s3020_s14 = scalar_lea.hbm %s3630_s6, 128 }
 0x97f   :  { %p3021_p11 = scmp.ne.s32.totalorder %s3630_s6, %s3020_s14  ;;  %p3024_p12 = scmp.lt.u32.totalorder %s3020_s14, %s3630_s6 }
 0x981   :  { %p3026_p13 = pnand %p3024_p12, %p3021_p11 }
 0x983   :  { %3029 = shalt.err (!%p3026_p13)
}
 0x984   :  { %2024 = dma.vmem_to_hbm [thread:$0]  %s2022_s17, 128, %s3630_s6, [#allocation7]  }
 0x985   :  { %3038 = dma.done.wait [#allocation7], 128  }
 0x986   :  { %3039 = vsyncadd [#allocation7], 4294967168 }
 0x987   :  { %2028 = vsyncpa [#allocation6], 1 }
 0x988   :  { %2029 = vsyncpa [#allocation9], 1 }
 0x989   :  { %2030 = vsyncpa [#allocation12], 1 }
 0x98a   :  { %2031 = vsyncpa [#allocation15], 1 }
 0x98b   :  { %2032 = vsyncpa [#allocation7], 1 }

</bundles_post_ra>
